<compile_context>
chip_gen: v6e
topology: v6e:2x2x1
jax: 0.10.0
libtpu: 0.0.40
codegen_flags: <defaults>
</compile_context>

<pallas_src>
import functools

import jax
import jax.numpy as jnp
from jax.experimental import pallas as pl
from jax.experimental.pallas import tpu as pltpu

ALPHA = 0.6  # ELU alpha

D_IN, D0, D1, D2, D3, D_OUT = 100, 256, 512, 256, 128, 1


def _elu(x, alpha=ALPHA):
    # ELU: x if x > 0 else alpha * (exp(x) - 1).  Keep the clamp on the
    # (always-evaluated) negative branch: with ragged last batch tiles the
    # padding rows are undefined and must not overflow exp().
    return jnp.where(x > 0, x, alpha * (jnp.exp(jnp.minimum(x, 0.0)) - 1.0))


def mlp_kernel(x_ref,
               w0_ref, b0_ref,
               w1_ref, b1_ref,
               w2_ref, b2_ref,
               w3_ref, b3_ref,
               w4t_ref, b4_ref,
               o_ref, *, compute_dtype, ew_dtype):
    def dense_elu(h, w_ref, b_ref):
        # MXU matmul in compute_dtype (bf16 on all chips by default), f32
        # accumulation; bias add + ELU in ew_dtype (bf16 on v6e/v7x, f32 on
        # v5e which has no bf16 VPU/EUP).
        y = jnp.dot(h.astype(compute_dtype), w_ref[...],
                    preferred_element_type=jnp.float32)
        return _elu(y.astype(ew_dtype) + b_ref[...])

    h = dense_elu(x_ref[...], w0_ref, b0_ref)
    # TODO(synk): nn.Dropout(0.3) is identity in eval mode; training-mode
    # masking would use pltpu.prng_seed / pltpu.prng_random_bits here.
    h = dense_elu(h, w1_ref, b1_ref)
    h = dense_elu(h, w2_ref, b2_ref)
    h = dense_elu(h, w3_ref, b3_ref)
    # Final (tile_m,128)@(128,1) layer as a VPU broadcast-multiply + XLU lane
    # reduction instead of an N=1 MXU matmul (both units have slack here).
    y = jnp.sum(h.astype(jnp.float32) * w4t_ref[...],
                axis=-1, keepdims=True) + b4_ref[...]
    o_ref[...] = y.astype(o_ref.dtype)


def _round_up(n, m):
    return (n + m - 1) // m * m


def _elementwise_dtype(use_bf16):
    """bf16 bias+ELU on chips with a bf16 VPU/EUP (v6e/v7x), f32 elsewhere."""
    if not use_bf16:
        return jnp.float32
    try:
        kind = jax.devices()[0].device_kind.lower()
    except Exception:
        return jnp.bfloat16
    if any(v in kind for v in ("v2", "v3", "v4", "v5")):
        return jnp.float32
    return jnp.bfloat16


def mlp_forward(x, params, *, tile_m=2048, use_bf16=True):
    """x: (B, 100) float.  params: weights w{i} of shape (in, out), biases
    b{i} of shape (1, out).

    tile_m: batch rows per grid step (multiple of 8).  2048 keeps per-step
    pipeline overhead at a few percent of compute while staying well under
    VMEM on every chip; when B is large enough the grid is forced to >= 2
    steps so v7x's two TensorCores both get work.

    use_bf16=True is recommended on all generations: the MXU is bf16-native
    even on v5e, and accumulation is always f32.
    """
    B = x.shape[0]
    assert x.shape[1] == D_IN

    # Clamp tile_m to the (sublane-rounded) batch, keep it a multiple of 8.
    tile_m = max(8, min(_round_up(tile_m, 8), _round_up(B, 8)))
    # Ensure >= 2 grid steps when there is enough work, so the "parallel"
    # batch axis can shard across both v7x TensorCores (harmless on v5e/v6e).
    if pl.cdiv(B, tile_m) < 2 and B >= 16:
        tile_m = _round_up(pl.cdiv(B, 2), 8)
    grid = (pl.cdiv(B, tile_m),)

    compute_dtype = jnp.bfloat16 if use_bf16 else jnp.float32
    ew_dtype = _elementwise_dtype(use_bf16)

    # Weights cast once host-side; x is passed untouched (no padded copy).
    w0 = params["w0"].astype(compute_dtype)          # (100, 256)
    w1 = params["w1"].astype(compute_dtype)          # (256, 512)
    w2 = params["w2"].astype(compute_dtype)          # (512, 256)
    w3 = params["w3"].astype(compute_dtype)          # (256, 128)
    w4t = params["w4"].astype(jnp.float32).T         # (1, 128) for VPU mul
    b0, b1, b2, b3 = (params[f"b{i}"].astype(ew_dtype) for i in range(4))
    b4 = params["b4"].astype(jnp.float32)             # (1, 1)

    def whole(arr):
        # Whole array resident in VMEM, same block every grid step.
        # (pipeline_mode=pl.Buffered(1) would drop the redundant second buffer;
        #  total weight footprint is ~1.3 MiB so the default is kept.)
        return pl.BlockSpec(arr.shape, lambda i: (0, 0))

    out = pl.pallas_call(
        functools.partial(mlp_kernel,
                          compute_dtype=compute_dtype, ew_dtype=ew_dtype),
        out_shape=jax.ShapeDtypeStruct((B, D_OUT), jnp.float32),
        grid_spec=pltpu.PrefetchScalarGridSpec(
            num_scalar_prefetch=0,
            grid=grid,
            in_specs=[
                pl.BlockSpec((tile_m, D_IN), lambda i: (i, 0)),  # x tile
                whole(w0), whole(b0),
                whole(w1), whole(b1),
                whole(w2), whole(b2),
                whole(w3), whole(b3),
                whole(w4t), whole(b4),
            ],
            out_specs=pl.BlockSpec((tile_m, D_OUT), lambda i: (i, 0)),
        ),
        compiler_params=pltpu.CompilerParams(
            dimension_semantics=("parallel",),
            vmem_limit_bytes=40 * 1024 * 1024),
    )(x, w0, b0, w1, b1, w2, b2, w3, b3, w4t, b4)

    return out


def init_params(key):
    """Deterministic Xavier-normal weights (stored (in, out)), zero biases."""
    dims = [(D_IN, D0), (D0, D1), (D1, D2), (D2, D3), (D3, D_OUT)]
    params = {}
    keys = jax.random.split(key, len(dims))
    for idx, ((fan_in, fan_out), k) in enumerate(zip(dims, keys)):
        std = (2.0 / (fan_in + fan_out)) ** 0.5
        params[f"w{idx}"] = std * jax.random.normal(k, (fan_in, fan_out),
                                                    dtype=jnp.float32)
        params[f"b{idx}"] = jnp.zeros((1, fan_out), dtype=jnp.float32)
    return params


def reference_forward(x, params):
    h = x
    for idx in range(4):
        h = _elu(h @ params[f"w{idx}"] + params[f"b{idx}"])
    return h @ params["w4"] + params["b4"]


if __name__ == "__main__":
    key = jax.random.PRNGKey(0)
    k_x, k_p = jax.random.split(key)

    B = 16  # small demo batch; tile_m auto-clamps to it (2 grid steps)
    x = jax.random.normal(k_x, (B, D_IN), dtype=jnp.float32)
    params = init_params(k_p)
    ref = reference_forward(x, params)

    # f32 matmul path (tolerance accommodates MXU multi-pass f32 rounding).
    out_f32 = jax.block_until_ready(mlp_forward(x, params, use_bf16=False))
    assert out_f32.shape == (B, D_OUT), out_f32.shape
    assert jnp.allclose(out_f32, ref, atol=5e-3, rtol=5e-3), (
        float(jnp.max(jnp.abs(out_f32 - ref))))

    # bf16 fast path (default): bf16 MXU inputs everywhere, bf16 bias+ELU on
    # v6e/v7x -> looser tolerance across the 5 layers.
    out_bf16 = jax.block_until_ready(mlp_forward(x, params, use_bf16=True))
    assert out_bf16.shape == (B, D_OUT), out_bf16.shape
    assert jnp.allclose(out_bf16, ref, atol=1e-1, rtol=1e-1), (
        float(jnp.max(jnp.abs(out_bf16 - ref))))

    print("KERNEL_OK")
</pallas_src>

<mosaic_0001>
module attributes {stable_mosaic.version = 11 : i64} {
  func.func @mlp_kernel(%arg0: i32, %arg1: memref<8x100xf32, #tpu.memory_space<vmem>>, %arg2: memref<100x256xf32, #tpu.memory_space<vmem>>, %arg3: memref<1x256xf32, #tpu.memory_space<vmem>>, %arg4: memref<256x512xf32, #tpu.memory_space<vmem>>, %arg5: memref<1x512xf32, #tpu.memory_space<vmem>>, %arg6: memref<512x256xf32, #tpu.memory_space<vmem>>, %arg7: memref<1x256xf32, #tpu.memory_space<vmem>>, %arg8: memref<256x128xf32, #tpu.memory_space<vmem>>, %arg9: memref<1x128xf32, #tpu.memory_space<vmem>>, %arg10: memref<1x128xf32, #tpu.memory_space<vmem>>, %arg11: memref<1x1xf32, #tpu.memory_space<vmem>>, %arg12: memref<8x1xf32, #tpu.memory_space<vmem>>) attributes {dimension_semantics = [#tpu.dimension_semantics<parallel>], iteration_bounds = array<i64: 2>, scalar_prefetch = 0 : i64, scratch_operands = 0 : i64, tpu.core_type = #tpu.core_type<tc>, window_params = [{transform_indices = @transform_0, window_bounds = array<i64: 8, 100>}, {pipeline_mode = #tpu.pipeline_mode<synchronous>, transform_indices = @transform_1, window_bounds = array<i64: 100, 256>}, {pipeline_mode = #tpu.pipeline_mode<synchronous>, transform_indices = @transform_2, window_bounds = array<i64: 1, 256>}, {pipeline_mode = #tpu.pipeline_mode<synchronous>, transform_indices = @transform_3, window_bounds = array<i64: 256, 512>}, {pipeline_mode = #tpu.pipeline_mode<synchronous>, transform_indices = @transform_4, window_bounds = array<i64: 1, 512>}, {pipeline_mode = #tpu.pipeline_mode<synchronous>, transform_indices = @transform_5, window_bounds = array<i64: 512, 256>}, {pipeline_mode = #tpu.pipeline_mode<synchronous>, transform_indices = @transform_6, window_bounds = array<i64: 1, 256>}, {pipeline_mode = #tpu.pipeline_mode<synchronous>, transform_indices = @transform_7, window_bounds = array<i64: 256, 128>}, {pipeline_mode = #tpu.pipeline_mode<synchronous>, transform_indices = @transform_8, window_bounds = array<i64: 1, 128>}, {pipeline_mode = #tpu.pipeline_mode<synchronous>, transform_indices = @transform_9, window_bounds = array<i64: 1, 128>}, {pipeline_mode = #tpu.pipeline_mode<synchronous>, transform_indices = @transform_10, window_bounds = array<i64: 1, 1>}, {transform_indices = @transform_11, window_bounds = array<i64: 8, 1>}]} {
    %c0 = arith.constant 0 : index
    %c0_0 = arith.constant 0 : index
    %0 = vector.load %arg1[%c0, %c0_0] : memref<8x100xf32, #tpu.memory_space<vmem>>, vector<8x100xf32>
    %c0_1 = arith.constant 0 : index
    %c0_2 = arith.constant 0 : index
    %1 = vector.load %arg2[%c0_1, %c0_2] : memref<100x256xf32, #tpu.memory_space<vmem>>, vector<100x256xf32>
    %cst = arith.constant dense<0.000000e+00> : vector<8x256xf32>
    %2 = tpu.matmul %0, %1, %cst {dimension_numbers = #tpu.dot_dimension_numbers<[1], [0], [0], [1], [0, 0, 1, 1], [], []>} : vector<8x100xf32>, vector<100x256xf32>, vector<8x256xf32> -> vector<8x256xf32>
    %c0_3 = arith.constant 0 : index
    %c0_4 = arith.constant 0 : index
    %3 = vector.load %arg3[%c0_3, %c0_4] : memref<1x256xf32, #tpu.memory_space<vmem>>, vector<1x256xf32>
    %4 = vector.broadcast %3 : vector<1x256xf32> to vector<8x256xf32>
    %5 = arith.addf %2, %4 : vector<8x256xf32>
    %cst_5 = arith.constant 0.000000e+00 : f32
    %6 = vector.broadcast %cst_5 : f32 to vector<8x256xf32>
    %7 = arith.cmpf ogt, %5, %6 : vector<8x256xf32>
    %cst_6 = arith.constant 0.000000e+00 : f32
    %8 = vector.broadcast %cst_6 : f32 to vector<8x256xf32>
    %9 = arith.minimumf %5, %8 : vector<8x256xf32>
    %10 = math.exp %9 : vector<8x256xf32>
    %cst_7 = arith.constant 1.000000e+00 : f32
    %11 = vector.broadcast %cst_7 : f32 to vector<8x256xf32>
    %12 = arith.subf %10, %11 : vector<8x256xf32>
    %cst_8 = arith.constant 6.000000e-01 : f32
    %13 = vector.broadcast %cst_8 : f32 to vector<8x256xf32>
    %14 = arith.mulf %13, %12 : vector<8x256xf32>
    %15 = arith.select %7, %5, %14 : vector<8x256xi1>, vector<8x256xf32>
    %c0_9 = arith.constant 0 : index
    %c0_10 = arith.constant 0 : index
    %16 = vector.load %arg4[%c0_9, %c0_10] : memref<256x512xf32, #tpu.memory_space<vmem>>, vector<256x512xf32>
    %cst_11 = arith.constant dense<0.000000e+00> : vector<8x512xf32>
    %17 = tpu.matmul %15, %16, %cst_11 {dimension_numbers = #tpu.dot_dimension_numbers<[1], [0], [0], [1], [0, 0, 1, 1], [], []>} : vector<8x256xf32>, vector<256x512xf32>, vector<8x512xf32> -> vector<8x512xf32>
    %c0_12 = arith.constant 0 : index
    %c0_13 = arith.constant 0 : index
    %18 = vector.load %arg5[%c0_12, %c0_13] : memref<1x512xf32, #tpu.memory_space<vmem>>, vector<1x512xf32>
    %19 = vector.broadcast %18 : vector<1x512xf32> to vector<8x512xf32>
    %20 = arith.addf %17, %19 : vector<8x512xf32>
    %cst_14 = arith.constant 0.000000e+00 : f32
    %21 = vector.broadcast %cst_14 : f32 to vector<8x512xf32>
    %22 = arith.cmpf ogt, %20, %21 : vector<8x512xf32>
    %cst_15 = arith.constant 0.000000e+00 : f32
    %23 = vector.broadcast %cst_15 : f32 to vector<8x512xf32>
    %24 = arith.minimumf %20, %23 : vector<8x512xf32>
    %25 = math.exp %24 : vector<8x512xf32>
    %cst_16 = arith.constant 1.000000e+00 : f32
    %26 = vector.broadcast %cst_16 : f32 to vector<8x512xf32>
    %27 = arith.subf %25, %26 : vector<8x512xf32>
    %cst_17 = arith.constant 6.000000e-01 : f32
    %28 = vector.broadcast %cst_17 : f32 to vector<8x512xf32>
    %29 = arith.mulf %28, %27 : vector<8x512xf32>
    %30 = arith.select %22, %20, %29 : vector<8x512xi1>, vector<8x512xf32>
    %c0_18 = arith.constant 0 : index
    %c0_19 = arith.constant 0 : index
    %31 = vector.load %arg6[%c0_18, %c0_19] : memref<512x256xf32, #tpu.memory_space<vmem>>, vector<512x256xf32>
    %cst_20 = arith.constant dense<0.000000e+00> : vector<8x256xf32>
    %32 = tpu.matmul %30, %31, %cst_20 {dimension_numbers = #tpu.dot_dimension_numbers<[1], [0], [0], [1], [0, 0, 1, 1], [], []>} : vector<8x512xf32>, vector<512x256xf32>, vector<8x256xf32> -> vector<8x256xf32>
    %c0_21 = arith.constant 0 : index
    %c0_22 = arith.constant 0 : index
    %33 = vector.load %arg7[%c0_21, %c0_22] : memref<1x256xf32, #tpu.memory_space<vmem>>, vector<1x256xf32>
    %34 = vector.broadcast %33 : vector<1x256xf32> to vector<8x256xf32>
    %35 = arith.addf %32, %34 : vector<8x256xf32>
    %cst_23 = arith.constant 0.000000e+00 : f32
    %36 = vector.broadcast %cst_23 : f32 to vector<8x256xf32>
    %37 = arith.cmpf ogt, %35, %36 : vector<8x256xf32>
    %cst_24 = arith.constant 0.000000e+00 : f32
    %38 = vector.broadcast %cst_24 : f32 to vector<8x256xf32>
    %39 = arith.minimumf %35, %38 : vector<8x256xf32>
    %40 = math.exp %39 : vector<8x256xf32>
    %cst_25 = arith.constant 1.000000e+00 : f32
    %41 = vector.broadcast %cst_25 : f32 to vector<8x256xf32>
    %42 = arith.subf %40, %41 : vector<8x256xf32>
    %cst_26 = arith.constant 6.000000e-01 : f32
    %43 = vector.broadcast %cst_26 : f32 to vector<8x256xf32>
    %44 = arith.mulf %43, %42 : vector<8x256xf32>
    %45 = arith.select %37, %35, %44 : vector<8x256xi1>, vector<8x256xf32>
    %c0_27 = arith.constant 0 : index
    %c0_28 = arith.constant 0 : index
    %46 = vector.load %arg8[%c0_27, %c0_28] : memref<256x128xf32, #tpu.memory_space<vmem>>, vector<256x128xf32>
    %cst_29 = arith.constant dense<0.000000e+00> : vector<8x128xf32>
    %47 = tpu.matmul %45, %46, %cst_29 {dimension_numbers = #tpu.dot_dimension_numbers<[1], [0], [0], [1], [0, 0, 1, 1], [], []>} : vector<8x256xf32>, vector<256x128xf32>, vector<8x128xf32> -> vector<8x128xf32>
    %c0_30 = arith.constant 0 : index
    %c0_31 = arith.constant 0 : index
    %48 = vector.load %arg9[%c0_30, %c0_31] : memref<1x128xf32, #tpu.memory_space<vmem>>, vector<1x128xf32>
    %49 = vector.broadcast %48 : vector<1x128xf32> to vector<8x128xf32>
    %50 = arith.addf %47, %49 : vector<8x128xf32>
    %cst_32 = arith.constant 0.000000e+00 : f32
    %51 = vector.broadcast %cst_32 : f32 to vector<8x128xf32>
    %52 = arith.cmpf ogt, %50, %51 : vector<8x128xf32>
    %cst_33 = arith.constant 0.000000e+00 : f32
    %53 = vector.broadcast %cst_33 : f32 to vector<8x128xf32>
    %54 = arith.minimumf %50, %53 : vector<8x128xf32>
    %55 = math.exp %54 : vector<8x128xf32>
    %cst_34 = arith.constant 1.000000e+00 : f32
    %56 = vector.broadcast %cst_34 : f32 to vector<8x128xf32>
    %57 = arith.subf %55, %56 : vector<8x128xf32>
    %cst_35 = arith.constant 6.000000e-01 : f32
    %58 = vector.broadcast %cst_35 : f32 to vector<8x128xf32>
    %59 = arith.mulf %58, %57 : vector<8x128xf32>
    %60 = arith.select %52, %50, %59 : vector<8x128xi1>, vector<8x128xf32>
    %c0_36 = arith.constant 0 : index
    %c0_37 = arith.constant 0 : index
    %61 = vector.load %arg10[%c0_36, %c0_37] : memref<1x128xf32, #tpu.memory_space<vmem>>, vector<1x128xf32>
    %62 = vector.broadcast %61 : vector<1x128xf32> to vector<8x128xf32>
    %63 = arith.mulf %60, %62 : vector<8x128xf32>
    %cst_38 = arith.constant dense<0.000000e+00> : vector<8xf32>
    %64 = vector.multi_reduction <add>, %63, %cst_38 [1] : vector<8x128xf32> to vector<8xf32>
    %65 = vector.shape_cast %64 : vector<8xf32> to vector<8x1xf32>
    %c0_39 = arith.constant 0 : index
    %c0_40 = arith.constant 0 : index
    %66 = vector.load %arg11[%c0_39, %c0_40] : memref<1x1xf32, #tpu.memory_space<vmem>>, vector<1x1xf32>
    %67 = vector.broadcast %66 : vector<1x1xf32> to vector<8x1xf32>
    %68 = arith.addf %65, %67 : vector<8x1xf32>
    %c0_41 = arith.constant 0 : index
    %c0_42 = arith.constant 0 : index
    %69 = vector.load %arg12[%c0_41, %c0_42] : memref<8x1xf32, #tpu.memory_space<vmem>>, vector<8x1xf32>
    tpu.vector_store %arg12[%c0_41, %c0_42], %68 {strides = array<i32>} : memref<8x1xf32, #tpu.memory_space<vmem>>, vector<8x1xf32>,
    return
  }
  func.func @transform_0(%arg0: i32) -> (i32, i32) {
    %c0_i32 = arith.constant 0 : i32
    %c0_i32_0 = arith.constant 0 : i32
    return %arg0, %c0_i32 : i32, i32
  }
  func.func @transform_1(%arg0: i32) -> (i32, i32) {
    %c0_i32 = arith.constant 0 : i32
    %c0_i32_0 = arith.constant 0 : i32
    %c0_i32_1 = arith.constant 0 : i32
    return %c0_i32, %c0_i32_0 : i32, i32
  }
  func.func @transform_2(%arg0: i32) -> (i32, i32) {
    %c0_i32 = arith.constant 0 : i32
    %c0_i32_0 = arith.constant 0 : i32
    %c0_i32_1 = arith.constant 0 : i32
    return %c0_i32, %c0_i32_0 : i32, i32
  }
  func.func @transform_3(%arg0: i32) -> (i32, i32) {
    %c0_i32 = arith.constant 0 : i32
    %c0_i32_0 = arith.constant 0 : i32
    %c0_i32_1 = arith.constant 0 : i32
    return %c0_i32, %c0_i32_0 : i32, i32
  }
  func.func @transform_4(%arg0: i32) -> (i32, i32) {
    %c0_i32 = arith.constant 0 : i32
    %c0_i32_0 = arith.constant 0 : i32
    %c0_i32_1 = arith.constant 0 : i32
    return %c0_i32, %c0_i32_0 : i32, i32
  }
  func.func @transform_5(%arg0: i32) -> (i32, i32) {
    %c0_i32 = arith.constant 0 : i32
    %c0_i32_0 = arith.constant 0 : i32
    %c0_i32_1 = arith.constant 0 : i32
    return %c0_i32, %c0_i32_0 : i32, i32
  }
  func.func @transform_6(%arg0: i32) -> (i32, i32) {
    %c0_i32 = arith.constant 0 : i32
    %c0_i32_0 = arith.constant 0 : i32
    %c0_i32_1 = arith.constant 0 : i32
    return %c0_i32, %c0_i32_0 : i32, i32
  }
  func.func @transform_7(%arg0: i32) -> (i32, i32) {
    %c0_i32 = arith.constant 0 : i32
    %c0_i32_0 = arith.constant 0 : i32
    %c0_i32_1 = arith.constant 0 : i32
    return %c0_i32, %c0_i32_0 : i32, i32
  }
  func.func @transform_8(%arg0: i32) -> (i32, i32) {
    %c0_i32 = arith.constant 0 : i32
    %c0_i32_0 = arith.constant 0 : i32
    %c0_i32_1 = arith.constant 0 : i32
    return %c0_i32, %c0_i32_0 : i32, i32
  }
  func.func @transform_9(%arg0: i32) -> (i32, i32) {
    %c0_i32 = arith.constant 0 : i32
    %c0_i32_0 = arith.constant 0 : i32
    %c0_i32_1 = arith.constant 0 : i32
    return %c0_i32, %c0_i32_0 : i32, i32
  }
  func.func @transform_10(%arg0: i32) -> (i32, i32) {
    %c0_i32 = arith.constant 0 : i32
    %c0_i32_0 = arith.constant 0 : i32
    %c0_i32_1 = arith.constant 0 : i32
    return %c0_i32, %c0_i32_0 : i32, i32
  }
  func.func @transform_11(%arg0: i32) -> (i32, i32) {
    %c0_i32 = arith.constant 0 : i32
    %c0_i32_0 = arith.constant 0 : i32
    return %arg0, %c0_i32 : i32, i32
  }
}

</mosaic_0001>

<bundles_post_ra>
// kernel: tpu_custom_call.1
= control target key start
LH: loop header
LB: loop body
LE: loop exit
PB: predicated region body
PF: predicated region fallthrough
CT: control target
= control target key end

     0   :  { %s2077_s0 = inlined_call_operand.hbm [shape: f32[16,100], index: 0, kind: input, shape index: {}]   ;;  %s2078_s1 = inlined_call_operand.hbm [shape: f32[100,256], index: 1, kind: input, shape index: {}]   ;;  %s2079_s2 = inlined_call_operand.vmem [shape: f32[1,256], index: 2, kind: input, shape index: {}]   ;;  %s2080_s3 = inlined_call_operand.hbm [shape: f32[256,512], index: 3, kind: input, shape index: {}]   ;;  %s2081_s4 = inlined_call_operand.vmem [shape: f32[1,512], index: 4, kind: input, shape index: {}]   ;;  %s2082_s5 = inlined_call_operand.hbm [shape: f32[512,256], index: 5, kind: input, shape index: {}]   ;;  %s2083_s6 = inlined_call_operand.vmem [shape: f32[1,256], index: 6, kind: input, shape index: {}]   ;;  %s2084_s7 = inlined_call_operand.hbm [shape: f32[256,128], index: 7, kind: input, shape index: {}]   ;;  %s2085_s8 = inlined_call_operand.vmem [shape: f32[1,128], index: 8, kind: input, shape index: {}]   ;;  %s2086_s9 = inlined_call_operand.vmem [shape: f32[1,128], index: 9, kind: input, shape index: {}]   ;;  %s2087_s10 = inlined_call_operand.<no memory space> [shape: f32[1,1], index: 10, kind: input, shape index: {}]   ;;  %s2088_s11 = inlined_call_operand.vmem [shape: f32[16,1], index: 11, kind: output, shape index: {}]  }
   0x1   :  { %2092 = sst [smem:[#allocation14_spill]] %s2078_s1  ;;  %v16_v0 = vstv %s2087_s10 }
   0x2   :  { %17 = vst [vmem:[#allocation2] sm:$0x1] %v16_v0 }
   0x3   :  { %18 = vsyncpa [#allocation4], 0 }
   0x4   :  { %20 = vsyncpa [#allocation4 + $0x1], 0 }
   0x5   :  { %21 = vsyncpa [#allocation6], 0 }
   0x6   :  { %22 = vsyncpa [#allocation9], 0  ;;  %s1876_s19 = smov 0   ;;  %s1878_s20 = smov 0  }
   0x7   :  { %s1880_s21 = smov 0   ;;  %s1882_s22 = smov 0  }
   0x8 LB: > { %s1801_s10 = smov [#allocation5]   ;;  %s1897_s24 = sadd.s32 4294967295, %s1799_s22   ;;  %s1799_s22 = sphi %s1882_s22, %s2107_s22   ;;  %s1795_s21 = sphi %s1880_s21, %s2106_s21   ;;  %s1791_s20 = sphi %s1878_s20, %s2105_s20   ;;  %s1787_s19 = sphi %s1876_s19, %s2104_s19  }
   0x9   : > { %s307_s23 = sshll.u32 %s1801_s10, 4  ;;  %p1453_p0 = scmp.ge.s32.totalorder %s1799_s22, 1  ;;  %s308_s23 = int_to_ptr.vmem [resolvable:$true] %s307_s23 }
   0xa   : > { %p2089_p1 = scmp.eq.s32.totalorder %s1897_s24, 0  ;;  %p295_p2 = scmp.lt.s32.totalorder %s1799_s22, 3 }
   0xb   : > { %s1802_s26 = smov [#allocation8]   ;;  %s1803_s29 = smov [#allocation7]  }
   0xc   : > { %p1902_p3 = pnand %p1453_p0, %p295_p2  ;;  %s339_s27 = sshll.u32 %s1802_s26, 4  ;;  %s1914_s27 = int_to_ptr.vmem [resolvable:$true] %s339_s27 }
   0xd   : > { %s323_s30 = sshll.u32 %s1803_s29, 4  ;;  %s1636_s12 = scalar_lea.vmem %s308_s23, 3328  ;;  %s1916_s30 = int_to_ptr.vmem [resolvable:$true] %s323_s30 }
   0xe   : > { %s2093_s25 = scalar_select %p1902_p3, 1, 0 }
   0xf   : > { %p1538_p4 = pneg %p1902_p3  ;;  %p1637_p7 = scmp.ne.s32.totalorder %s308_s23, %s1636_s12 }
  0x10   : > { %p1644_p10 = scmp.lt.s32.totalorder %s308_s23, %s308_s23  ;;  %p1645_p11 = scmp.lt.s32.totalorder %s1636_s12, %s1636_s12 }
  0x11   : > { %p1910_p5 = pnand %p1538_p4, %p2089_p1 }
  0x12   : > { %p1646_p12 = por %p1645_p11, %p1644_p10 }
  0x13   : > { %p1627_p6 = pneg %p1910_p5 }
  0x15   : > { %p1639_p8 = pnand %p1637_p7, %p1627_p6 }
  0x17   : > { %p1640_p9 = pneg %p1639_p8 }
  0x19   : > { %p1647_p13 = pnand %p1646_p12, %p1640_p9 }
  0x1b   : > { %1650 = shalt.err (!%p1647_p13)
}
  0x1c   : > { %s1804_s13 = smov 256   ;;  %s1805_s14 = smov 16  }
  0x1d   : > { %s2095_s1 = sld [smem:[#allocation14_spill]]  ;;  %s1662_s17 = scalar_lea.vmem %s1914_s27, 16384 }
  0x1e   : > { %p1663_p0 = scmp.ne.s32.totalorder %s1914_s27, %s1662_s17  ;;  %p1670_p7 = scmp.lt.s32.totalorder %s1914_s27, %s1914_s27 }
  0x1f   : > { %p1671_p8 = scmp.lt.s32.totalorder %s1662_s17, %s1662_s17 }
  0x20   : > { %p1665_p2 = pnand %p1663_p0, %p1627_p6 }
  0x21   : > { %p1672_p9 = por %p1671_p8, %p1670_p7 }
  0x22   : > { %p1666_p4 = pneg %p1665_p2 }
  0x23   : > { %1541 = dma.hbm_to_vmem [thread:$0]  (!%p1910_p5), %s2095_s1, 3328, %s308_s23, [#allocation6], %s1804_s13, %s1804_s13, %s1805_s14  }
  0x24   : > { %p1673_p10 = pnand %p1672_p9, %p1666_p4 }
  0x26   : > { %1676 = shalt.err (!%p1673_p10)
}
  0x27   : > { %1547 = dma.hbm_to_vmem [thread:$0]  (!%p1910_p5), %s2082_s5, 16384, %s1914_s27, [#allocation9], %s1804_s13, %s1804_s13, %s1805_s14  }
  0x28   : > { %s1688_s23 = scalar_lea.vmem %s1916_s30, 16384  ;;  %p1696_p0 = scmp.lt.s32.totalorder %s1916_s30, %s1916_s30 }
  0x29   : > { %p1689_p11 = scmp.ne.s32.totalorder %s1916_s30, %s1688_s23  ;;  %p1697_p2 = scmp.lt.s32.totalorder %s1688_s23, %s1688_s23 }
  0x2b   : > { %p1691_p12 = pnand %p1689_p11, %p1627_p6  ;;  %p1698_p4 = por %p1697_p2, %p1696_p0 }
  0x2d   : > { %p1692_p13 = pneg %p1691_p12 }
  0x2f   : > { %p1699_p7 = pnand %p1698_p4, %p1692_p13 }
  0x31   : > { %1702 = shalt.err (!%p1699_p7)
}
  0x32   : > { %s1806_s26 = smov 512   ;;  %s1807_s29 = smov 32  }
  0x33   : > { %1544 = dma.hbm_to_vmem [thread:$0]  (!%p1910_p5), %s2080_s3, 16384, %s1916_s30, [#allocation6], %s1806_s26, %s1806_s26, %s1807_s29  }
  0x34   : > { %s1808_s13 = smov [#allocation10]  }
  0x35   : > { %s355_s14 = sshll.u32 %s1808_s13, 4  ;;  %s356_s14 = int_to_ptr.vmem [resolvable:$true] %s355_s14 }
  0x36   : > { %s1714_s15 = scalar_lea.vmem %s356_s14, 4096  ;;  %p1722_p11 = scmp.lt.s32.totalorder %s356_s14, %s356_s14 }
  0x37   : > { %p1715_p8 = scmp.ne.s32.totalorder %s356_s14, %s1714_s15  ;;  %p1723_p12 = scmp.lt.s32.totalorder %s1714_s15, %s1714_s15 }
  0x39   : > { %p1717_p9 = pnand %p1715_p8, %p1627_p6  ;;  %p1724_p13 = por %p1723_p12, %p1722_p11 }
  0x3b   : > { %p1718_p10 = pneg %p1717_p9 }
  0x3d   : > { %p1725_p0 = pnand %p1724_p13, %p1718_p10 }
  0x3f   : > { %1728 = shalt.err (!%p1725_p0)
}
  0x40   : > { %s1809_s16 = smov 128   ;;  %s1810_s30 = smov 8  }
  0x41   : > { %1550 = dma.hbm_to_vmem [thread:$0]  (!%p1910_p5), %s2084_s7, 4096, %s356_s14, [#allocation9], %s1809_s16, %s1809_s16, %s1810_s30  }
  0x42   : > { %s1963_s10 = sadd.s32 1, %s1799_s22   ;;  %s35_s23 = sadd.s32 1, %s1795_s21 }
  0x43   : > { %s32_s26 = ssub.s32 %s1799_s22, %s1963_s10  ;;  %p42_p6 = scmp.ne.s32.totalorder %s1795_s21, %s1791_s20 }
  0x44   : > { %p33_p2 = scmp.eq.s32.totalorder %s32_s26, 0  ;;  %p43_p4 = scmp.eq.s32.totalorder %s1799_s22, 0 }
  0x45   : > { %p48_p7 = scmp.ne.s32.totalorder %s1791_s20, %s1787_s19  ;;  %p1559_p8 = scmp.lt.s32.totalorder %s1799_s22, 2 }
  0x46   : > { %s1975_s29 = scalar_select %p33_p2, %s1795_s21, %s35_s23  }
  0x47   : > { %p44_p9 = por %p43_p4, %p42_p6  ;;  %p1979_p10 = por %p2089_p1, %p48_p7 }
  0x48   : > { %s378_s12 = sand.u32 1, %s1795_s21   ;;  %s1460_s27 = sshll.u32 %s1799_s22, 7 }
  0x49   : > { %s2096_s28 = scalar_select %p1979_p10, 1, 0 }
  0x4a   : > { %s1459_s13 = sshll.u32 %s378_s12, 3  ;;  %s1988_s16 = scalar_lea.hbm %s2077_s0, %s1460_s27 }
  0x4b   : > { %s382_s19 = scalar_lea.vmem [#allocation3], %s1459_s13  ;;  %p1990_p5 = pnand %p1559_p8, %p44_p9 }
  0x4c   : > { %s389_s30 = sshll.u32 %s382_s19, 4  ;;  %s379_s18 = scalar_lea.sflag [#allocation4], %s378_s12  ;;  %s390_s30 = int_to_ptr.vmem [resolvable:$true] %s389_s30 }
  0x4d   : > { %s1729_s23 = scalar_lea.hbm %s1988_s16, 128  ;;  %p1731_p12 = pneg %p1990_p5 }
  0x4e   : > { %p1730_p11 = scmp.ne.s32.totalorder %s1988_s16, %s1729_s23  ;;  %s1734_s27 = scalar_lea.hbm %s2077_s0, 256 }
  0x4f   : > { %p1735_p6 = scmp.lt.s32.totalorder %s1988_s16, %s2077_s0  ;;  %p1736_p2 = scmp.lt.s32.totalorder %s1734_s27, %s1729_s23 }
  0x50   : > { %p1732_p13 = pnand %p1731_p12, %p1730_p11 }
  0x51   : > { %p1737_p4 = por %p1736_p2, %p1735_p6 }
  0x52   : > { %p1733_p0 = pneg %p1732_p13 }
  0x54   : > { %p1738_p7 = pnand %p1737_p4, %p1733_p0 }
  0x56   : > { %1741 = shalt.err (!%p1738_p7)
}
  0x57   : > { %s1742_s15 = scalar_lea.vmem %s390_s30, 128  ;;  %s1811_s12 = smov [#allocation3]  }
  0x58   : > { %p1743_p8 = scmp.ne.s32.totalorder %s390_s30, %s1742_s15  ;;  %s1747_s19 = sshll.u32 %s1811_s12, 4  ;;  %s1748_s19 = int_to_ptr.vmem [resolvable:$false] %s1747_s19 }
  0x59   : > { %s1749_s1 = scalar_lea.vmem %s1748_s19, 256  ;;  %p1750_p11 = scmp.lt.s32.totalorder %s390_s30, %s1748_s19 }
  0x5a   : > { %p1745_p9 = pnand %p1743_p8, %p1731_p12  ;;  %p1751_p13 = scmp.lt.s32.totalorder %s1749_s1, %s1742_s15 }
  0x5c   : > { %p1746_p1 = pneg %p1745_p9  ;;  %p1752_p10 = por %p1751_p13, %p1750_p11 }
  0x5e   : > { %p1753_p3 = pnand %p1752_p10, %p1746_p1 }
  0x60   : > { %1756 = shalt.err (!%p1753_p3)
}
  0x61   : > { %1554 = dma.hbm_to_vmem [thread:$0]  (!%p1990_p5), %s1988_s16, 128, %s390_s30, %s379_s18  }
  0x62   : > { %p2098_p0 = scmp.ne.s32.totalorder %s2093_s25, 0 }
  0x63   : > { %s400_s23 = sand.u32 (!%p2098_p0), 1, %s1791_s20   ;;  %p2099_p12 = scmp.ne.s32.totalorder (!%p2098_p0), %s2096_s28, 0 }
  0x64   : > { %398 = sbr.rel (%p2098_p0) target bundleno = 1169 (0x491), region = 64  ;;  %s2011_s22 = sshll.u32 (!%p2098_p0), %s400_s23, 3 }
  0x65   : > { %s401_s26 = scalar_lea.sflag (!%p2098_p0), [#allocation4], %s400_s23  ;;  %s404_s27 = scalar_lea.vmem (!%p2098_p0), [#allocation3], %s2011_s22 }
  0x69   : > { %1774 = dma.done.wait (%p2099_p12), %s401_s26, 128  }
  0x6a   : > { %1776 = vsyncadd (%p2099_p12), %s401_s26, 4294967168  ;;  %p2100_p1 = scmp.eq.s32.totalorder %s1897_s24, 0 }
  0x6c   : > { %1778 = dma.done.wait (%p2100_p1), [#allocation6], 19712   ;;  %p2101_p3 = pmov %p2100_p1 }
  0x6d   : > { %p2102_p10 = pmov %p2100_p1 }
  0x6e   : > { %1780 = vsyncadd (%p2101_p3), [#allocation6], 4294947584 }
  0x6f   : > { %1782 = dma.done.wait (%p2102_p10), [#allocation9], 20480   ;;  %p2103_p5 = pmov %p2100_p1 }
  0x70   : > { %v1812_v1 = vmov 0.0   ;;  %vm505_vm0 = vcmask 1043456   ;;  %v488_v2 = vld [vmem:[#allocation5 + $0xc8] sm:$0xf]  ;;  %v487_v3 = vld [vmem:[#allocation5 + $0xc0] sm:$0xf] }
  0x71   : > { %1784 = vsyncadd (%p2103_p5), [#allocation9], 4294946816  ;;  %576 = vmatprep.mubr.f32.mxu0 %v1812_v1  ;;  %v486_v4 = vld [vmem:[#allocation5 + $0xb8] sm:$0xff]  ;;  %1468 = vmatprep.subr.msk.mxu0 %vm505_vm0, %v488_v2  ;;  %v485_v5 = vld [vmem:[#allocation5 + $0xb0] sm:$0xff]  ;;  %vm501_vm1 = vcmask 818176   ;;  %p458_p6 = scmp.lt.s32.totalorder %s1897_s24, 1 }
  0x72   : > { %1469 = vmatpush1.msk.msra.mxu0 %vm505_vm0, %v487_v3  ;;  %v484_v6 = vld [vmem:[#allocation5 + $0xa8] sm:$0xff]  ;;  %v483_v7 = vld [vmem:[#allocation5 + $0xa0] sm:$0xff]  ;;  %v482_v8 = vld [vmem:[#allocation5 + $0x98] sm:$0xff]  ;;  %vm1347_vm11 = vcmask 7168  }
  0x73   : > { %520 = vmatprep.subr.mxu0 %v486_v4  ;;  %v481_v9 = vld [vmem:[#allocation5 + $0x90] sm:$0xff]  ;;  %v480_v10 = vld [vmem:[#allocation5 + $0x88] sm:$0xff]  ;;  %v479_v11 = vld [vmem:[#allocation5 + $0x80] sm:$0xff]  ;;  %s2109_s24 = smov (!%p458_p6, %s1897_s24), 1 }
  0x74   : > { %521 = vmatpush1.msra.mxu0 %v485_v5  ;;  %v478_v12 = vld [vmem:[#allocation5 + $0x78] sm:$0xff]  ;;  %v477_v13 = vld [vmem:[#allocation5 + $0x70] sm:$0xff]  ;;  %v476_v16 = vld [vmem:[#allocation5 + $0x68] sm:$0xff]  ;;  %s1467_s12 = sshll.u32 %s2109_s24, 3 }
  0x75   : > { %522 = vmatprep.subr.mxu0 %v484_v6  ;;  %v658_v14 = vld [vmem:[#allocation7 + $0x1e8] sm:$0xff]  ;;  %v657_v15 = vld [vmem:[#allocation7 + $0x1e0] sm:$0xff]  ;;  %v475_v18 = vld [vmem:[#allocation5 + $0x60] sm:$0xff]  ;;  %s461_s22 = scalar_lea.vmem %s2088_s11, %s1467_s12 }
  0x76   : > { %523 = vmatpush1.msra.mxu0 %v483_v7  ;;  %747 = vmatprep.subr.mxu1 %v658_v14  ;;  %v654_v17 = vld [vmem:[#allocation7 + $0x1c8] sm:$0xff]  ;;  %v653_v19 = vld [vmem:[#allocation7 + $0x1c0] sm:$0xff]  ;;  %v472_v25 = vld [vmem:[#allocation5 + $0x48] sm:$0xff] }
  0x77   : > { %524 = vmatprep.subr.mxu0 %v482_v8  ;;  %748 = vmatpush1.msra.mxu1 %v657_v15  ;;  %v650_v20 = vld [vmem:[#allocation7 + $0x1a8] sm:$0xff]  ;;  %v649_v22 = vld [vmem:[#allocation7 + $0x1a0] sm:$0xff]  ;;  %v471_v27 = vld [vmem:[#allocation5 + $0x40] sm:$0xff] }
  0x78   : > { %525 = vmatpush1.msra.mxu0 %v481_v9  ;;  %v474_v21 = vld [vmem:[#allocation5 + $0x58] sm:$0xff]  ;;  %749 = vmatprep.subr.mxu1 %v654_v17  ;;  %v473_v23 = vld [vmem:[#allocation5 + $0x50] sm:$0xff]  ;;  %v468_v33 = vld [vmem:[#allocation5 + $0x28] sm:$0xff] }
  0x79   : > { %526 = vmatprep.subr.mxu0 %v480_v10  ;;  %750 = vmatpush1.msra.mxu1 %v653_v19  ;;  %v646_v24 = vld [vmem:[#allocation7 + $0x188] sm:$0xff]  ;;  %v645_v26 = vld [vmem:[#allocation7 + $0x180] sm:$0xff]  ;;  %v467_v35 = vld [vmem:[#allocation5 + $0x20] sm:$0xff] }
  0x7a   : > { %527 = vmatpush1.msra.mxu0 %v479_v11  ;;  %751 = vmatprep.subr.mxu1 %v650_v20  ;;  %v642_v28 = vld [vmem:[#allocation7 + $0x168] sm:$0xff]  ;;  %v641_v30 = vld [vmem:[#allocation7 + $0x160] sm:$0xff]  ;;  %v464_v41 = vld [vmem:[#allocation5 + $0x8] sm:$0xff] }
  0x7b   : > { %528 = vmatprep.subr.mxu0 %v478_v12  ;;  %752 = vmatpush1.msra.mxu1 %v649_v22  ;;  %v470_v29 = vld [vmem:[#allocation5 + $0x38] sm:$0xff]  ;;  %v469_v31 = vld [vmem:[#allocation5 + $0x30] sm:$0xff]  ;;  %v463_v43 = vld [vmem:[#allocation5] sm:$0xff] }
  0x7c   : > { %529 = vmatpush1.msra.mxu0 %v477_v13  ;;  %753 = vmatprep.subr.mxu1 %v646_v24  ;;  %v638_v32 = vld [vmem:[#allocation7 + $0x148] sm:$0xff]  ;;  %v637_v34 = vld [vmem:[#allocation7 + $0x140] sm:$0xff]  ;;  %v660_v46 = vld [vmem:[#allocation7 + $0x1f8] sm:$0xff] }
  0x7d   : > { %530 = vmatprep.subr.mxu0 %v476_v16  ;;  %754 = vmatpush1.msra.mxu1 %v645_v26  ;;  %v634_v36 = vld [vmem:[#allocation7 + $0x128] sm:$0xff]  ;;  %v633_v38 = vld [vmem:[#allocation7 + $0x120] sm:$0xff]  ;;  %v659_v47 = vld [vmem:[#allocation7 + $0x1f0] sm:$0xff] }
  0x7e   : > { %531 = vmatpush1.msra.mxu0 %v475_v18  ;;  %755 = vmatprep.subr.mxu1 %v642_v28  ;;  %v466_v37 = vld [vmem:[#allocation5 + $0x18] sm:$0xff]  ;;  %v465_v39 = vld [vmem:[#allocation5 + $0x10] sm:$0xff]  ;;  %v656_v49 = vld [vmem:[#allocation7 + $0x1d8] sm:$0xff] }
  0x7f   : > { %532 = vmatprep.subr.mxu0 %v474_v21  ;;  %756 = vmatpush1.msra.mxu1 %v641_v30  ;;  %v630_v40 = vld [vmem:[#allocation7 + $0x108] sm:$0xff]  ;;  %v629_v42 = vld [vmem:[#allocation7 + $0x100] sm:$0xff]  ;;  %v655_v51 = vld [vmem:[#allocation7 + $0x1d0] sm:$0xff] }
  0x80   : > { %533 = vmatpush1.msra.mxu0 %v473_v23  ;;  %757 = vmatprep.subr.mxu1 %v638_v32  ;;  %v626_v44 = vld [vmem:[#allocation7 + $0xe8] sm:$0xff]  ;;  %v625_v48 = vld [vmem:[#allocation7 + $0xe0] sm:$0xff]  ;;  %v652_v53 = vld [vmem:[#allocation7 + $0x1b8] sm:$0xff] }
  0x81   : > { %534 = vmatprep.subr.mxu0 %v472_v25  ;;  %758 = vmatpush1.msra.mxu1 %v637_v34  ;;  %v462_v45 = vld [vmem:[%s404_s27] sm:$0xff]  ;;  %v651_v55 = vld [vmem:[#allocation7 + $0x1b0] sm:$0xff]  ;;  %v648_v57 = vld [vmem:[#allocation7 + $0x198] sm:$0xff] }
  0x82   : > { %535 = vmatpush1.msra.mxu0 %v471_v27  ;;  %759 = vmatprep.subr.mxu1 %v634_v36  ;;  %v622_v50 = vld [vmem:[#allocation7 + $0xc8] sm:$0xff]  ;;  %v621_v52 = vld [vmem:[#allocation7 + $0xc0] sm:$0xff]  ;;  %v647_v59 = vld [vmem:[#allocation7 + $0x190] sm:$0xff] }
  0x83   : > { %536 = vmatprep.subr.mxu0 %v470_v29  ;;  %760 = vmatpush1.msra.mxu1 %v633_v38  ;;  %v618_v54 = vld [vmem:[#allocation7 + $0xa8] sm:$0xff]  ;;  %v617_v56 = vld [vmem:[#allocation7 + $0xa0] sm:$0xff]  ;;  %v644_v61 = vld [vmem:[#allocation7 + $0x178] sm:$0xff] }
  0x84   : > { %537 = vmatpush1.msra.mxu0 %v469_v31  ;;  %761 = vmatprep.subr.mxu1 %v630_v40  ;;  %v614_v58 = vld [vmem:[#allocation7 + $0x88] sm:$0xff]  ;;  %v613_v60 = vld [vmem:[#allocation7 + $0x80] sm:$0xff]  ;;  %v643_v63 = vld [vmem:[#allocation7 + $0x170] sm:$0xff] }
  0x85   : > { %538 = vmatprep.subr.mxu0 %v468_v33  ;;  %762 = vmatpush1.msra.mxu1 %v629_v42  ;;  %v610_v62 = vld [vmem:[#allocation7 + $0x68] sm:$0xff]  ;;  %v609_v0 = vld [vmem:[#allocation7 + $0x60] sm:$0xff]  ;;  %v640_v1 = vld [vmem:[#allocation7 + $0x158] sm:$0xff] }
  0x86   : > { %539 = vmatpush1.msra.mxu0 %v467_v35  ;;  %763 = vmatprep.subr.mxu1 %v626_v44  ;;  %v606_v2 = vld [vmem:[#allocation7 + $0x48] sm:$0xff]  ;;  %v639_v3 = vld [vmem:[#allocation7 + $0x150] sm:$0xff]  ;;  %v605_v4 = vld [vmem:[#allocation7 + $0x40] sm:$0xff] }
  0x87   : > { %540 = vmatprep.subr.mxu0 %v466_v37  ;;  %764 = vmatpush1.msra.mxu1 %v625_v48  ;;  %v636_v5 = vld [vmem:[#allocation7 + $0x138] sm:$0xff]  ;;  %v602_v6 = vld [vmem:[#allocation7 + $0x28] sm:$0xff]  ;;  %v635_v7 = vld [vmem:[#allocation7 + $0x130] sm:$0xff] }
  0x88   : > { %541 = vmatpush1.msra.mxu0 %v465_v39  ;;  %765 = vmatprep.subr.mxu1 %v622_v50  ;;  %v601_v8 = vld [vmem:[#allocation7 + $0x20] sm:$0xff]  ;;  %v632_v9 = vld [vmem:[#allocation7 + $0x118] sm:$0xff]  ;;  %v598_v10 = vld [vmem:[#allocation7 + $0x8] sm:$0xff] }
  0x89   : > { %542 = vmatprep.subr.mxu0 %v464_v41  ;;  %766 = vmatpush1.msra.mxu1 %v621_v52  ;;  %v631_v11 = vld [vmem:[#allocation7 + $0x110] sm:$0xff]  ;;  %v597_v12 = vld [vmem:[#allocation7] sm:$0xff]  ;;  %v628_v13 = vld [vmem:[#allocation7 + $0xf8] sm:$0xff] }
  0x8a   : > { %543 = vmatpush1.msra.mxu0 %v463_v43  ;;  %767 = vmatprep.subr.mxu1 %v618_v54  ;;  %v722_v14 = vld [vmem:[#allocation7 + $0x3e8] sm:$0xff]  ;;  %v627_v15 = vld [vmem:[#allocation7 + $0xf0] sm:$0xff]  ;;  %v721_v16 = vld [vmem:[#allocation7 + $0x3e0] sm:$0xff] }
  0x8b   : > { %1470 = vmatmul.mubr.msk.f32.vlgmr.msra.gmra.mxu0 %vm501_vm1, %v462_v45  ;;  %818 = vmatprep.subr.mxu0 %v660_v46  ;;  %v624_v17 = vld [vmem:[#allocation7 + $0xd8] sm:$0xff]  ;;  %v718_v18 = vld [vmem:[#allocation7 + $0x3c8] sm:$0xff]  ;;  %v623_v19 = vld [vmem:[#allocation7 + $0xd0] sm:$0xff] }
  0x8c   : > { %819 = vmatpush1.msra.mxu0 %v659_v47  ;;  %768 = vmatpush1.msra.mxu1 %v617_v56  ;;  %v620_v20 = vld [vmem:[#allocation7 + $0xb8] sm:$0xff]  ;;  %v619_v21 = vld [vmem:[#allocation7 + $0xb0] sm:$0xff]  ;;  %v717_v35 = vld [vmem:[#allocation7 + $0x3c0] sm:$0xff] }
  0x8d   : > { %820 = vmatprep.subr.mxu0 %v656_v49  ;;  %769 = vmatprep.subr.mxu1 %v614_v58  ;;  %v616_v22 = vld [vmem:[#allocation7 + $0x98] sm:$0xff]  ;;  %v615_v23 = vld [vmem:[#allocation7 + $0x90] sm:$0xff]  ;;  %v714_v37 = vld [vmem:[#allocation7 + $0x3a8] sm:$0xff] }
  0x8e   : > { %821 = vmatpush1.msra.mxu0 %v655_v51  ;;  %770 = vmatpush1.msra.mxu1 %v613_v60  ;;  %v612_v24 = vld [vmem:[#allocation7 + $0x78] sm:$0xff]  ;;  %v611_v25 = vld [vmem:[#allocation7 + $0x70] sm:$0xff]  ;;  %v713_v39 = vld [vmem:[#allocation7 + $0x3a0] sm:$0xff] }
  0x8f   : > { %822 = vmatprep.subr.mxu0 %v652_v53  ;;  %771 = vmatprep.subr.mxu1 %v610_v62  ;;  %v608_v26 = vld [vmem:[#allocation7 + $0x58] sm:$0xff]  ;;  %v607_v27 = vld [vmem:[#allocation7 + $0x50] sm:$0xff]  ;;  %v710_v41 = vld [vmem:[#allocation7 + $0x388] sm:$0xff] }
  0x90   : > { %823 = vmatpush1.msra.mxu0 %v651_v55  ;;  %772 = vmatpush1.msra.mxu1 %v609_v0  ;;  %v604_v28 = vld [vmem:[#allocation7 + $0x38] sm:$0xff]  ;;  %v603_v29 = vld [vmem:[#allocation7 + $0x30] sm:$0xff]  ;;  %v709_v43 = vld [vmem:[#allocation7 + $0x380] sm:$0xff] }
  0x91   : > { %824 = vmatprep.subr.mxu0 %v648_v57  ;;  %773 = vmatprep.subr.mxu1 %v606_v2  ;;  %v600_v30 = vld [vmem:[#allocation7 + $0x18] sm:$0xff]  ;;  %v599_v31 = vld [vmem:[#allocation7 + $0x10] sm:$0xff]  ;;  %v706_v45 = vld [vmem:[#allocation7 + $0x368] sm:$0xff] }
  0x92   : > { %825 = vmatpush1.msra.mxu0 %v647_v59  ;;  %774 = vmatpush1.msra.mxu1 %v605_v4  ;;  %v724_v32 = vld [vmem:[#allocation7 + $0x3f8] sm:$0xff]  ;;  %v723_v33 = vld [vmem:[#allocation7 + $0x3f0] sm:$0xff]  ;;  %v705_v47 = vld [vmem:[#allocation7 + $0x360] sm:$0xff] }
  0x93   : > { %826 = vmatprep.subr.mxu0 %v644_v61  ;;  %775 = vmatprep.subr.mxu1 %v602_v6  ;;  %v720_v34 = vld [vmem:[#allocation7 + $0x3d8] sm:$0xff]  ;;  %v719_v36 = vld [vmem:[#allocation7 + $0x3d0] sm:$0xff]  ;;  %v702_v49 = vld [vmem:[#allocation7 + $0x348] sm:$0xff] }
  0x94   : > { %827 = vmatpush1.msra.mxu0 %v643_v63  ;;  %776 = vmatpush1.msra.mxu1 %v601_v8  ;;  %v716_v38 = vld [vmem:[#allocation7 + $0x3b8] sm:$0xff]  ;;  %v715_v40 = vld [vmem:[#allocation7 + $0x3b0] sm:$0xff]  ;;  %v701_v51 = vld [vmem:[#allocation7 + $0x340] sm:$0xff] }
  0x95   : > { %828 = vmatprep.subr.mxu0 %v640_v1  ;;  %777 = vmatprep.subr.mxu1 %v598_v10  ;;  %v712_v42 = vld [vmem:[#allocation7 + $0x398] sm:$0xff]  ;;  %v711_v44 = vld [vmem:[#allocation7 + $0x390] sm:$0xff]  ;;  %v698_v53 = vld [vmem:[#allocation7 + $0x328] sm:$0xff] }
  0x96   : > { %829 = vmatpush1.msra.mxu0 %v639_v3  ;;  %778 = vmatpush1.msra.mxu1 %v597_v12  ;;  %v708_v46 = vld [vmem:[#allocation7 + $0x378] sm:$0xff]  ;;  %v707_v48 = vld [vmem:[#allocation7 + $0x370] sm:$0xff]  ;;  %v697_v55 = vld [vmem:[#allocation7 + $0x320] sm:$0xff] }
  0x97   : > { %830 = vmatprep.subr.mxu0 %v636_v5  ;;  %779 = vmatprep.subr.mxu1 %v722_v14  ;;  %v704_v50 = vld [vmem:[#allocation7 + $0x358] sm:$0xff]  ;;  %v703_v52 = vld [vmem:[#allocation7 + $0x350] sm:$0xff]  ;;  %v694_v57 = vld [vmem:[#allocation7 + $0x308] sm:$0xff] }
  0x98   : > { %831 = vmatpush1.msra.mxu0 %v635_v7  ;;  %780 = vmatpush2.msra.mxu1 %v721_v16  ;;  %v700_v54 = vld [vmem:[#allocation7 + $0x338] sm:$0xff]  ;;  %v699_v56 = vld [vmem:[#allocation7 + $0x330] sm:$0xff]  ;;  %v693_v59 = vld [vmem:[#allocation7 + $0x300] sm:$0xff] }
  0x99   : > { %832 = vmatprep.subr.mxu0 %v632_v9  ;;  %781 = vmatprep.subr.mxu1 %v718_v18  ;;  %v696_v58 = vld [vmem:[#allocation7 + $0x318] sm:$0xff]  ;;  %v695_v60 = vld [vmem:[#allocation7 + $0x310] sm:$0xff]  ;;  %v690_v61 = vld [vmem:[#allocation7 + $0x2e8] sm:$0xff] }
  0x9a   : > { %833 = vmatpush1.msra.mxu0 %v631_v11  ;;  %782 = vmatpush2.msra.mxu1 %v717_v35  ;;  %v692_v62 = vld [vmem:[#allocation7 + $0x2f8] sm:$0xff]  ;;  %v689_v63 = vld [vmem:[#allocation7 + $0x2e0] sm:$0xff]  ;;  %v691_v0 = vld [vmem:[#allocation7 + $0x2f0] sm:$0xff] }
  0x9b   : > { %834 = vmatprep.subr.mxu0 %v628_v13  ;;  %783 = vmatprep.subr.mxu1 %v714_v37  ;;  %v686_v1 = vld [vmem:[#allocation7 + $0x2c8] sm:$0xff]  ;;  %v688_v2 = vld [vmem:[#allocation7 + $0x2d8] sm:$0xff]  ;;  %v685_v3 = vld [vmem:[#allocation7 + $0x2c0] sm:$0xff] }
  0x9c   : > { %835 = vmatpush1.msra.mxu0 %v627_v15  ;;  %784 = vmatpush2.msra.mxu1 %v713_v39  ;;  %v687_v4 = vld [vmem:[#allocation7 + $0x2d0] sm:$0xff]  ;;  %v682_v5 = vld [vmem:[#allocation7 + $0x2a8] sm:$0xff]  ;;  %v684_v6 = vld [vmem:[#allocation7 + $0x2b8] sm:$0xff] }
  0x9d   : > { %836 = vmatprep.subr.mxu0 %v624_v17  ;;  %785 = vmatprep.subr.mxu1 %v710_v41  ;;  %v681_v7 = vld [vmem:[#allocation7 + $0x2a0] sm:$0xff]  ;;  %v683_v8 = vld [vmem:[#allocation7 + $0x2b0] sm:$0xff]  ;;  %v678_v9 = vld [vmem:[#allocation7 + $0x288] sm:$0xff] }
  0x9e   : > { %837 = vmatpush1.msra.mxu0 %v623_v19  ;;  %786 = vmatpush2.msra.mxu1 %v709_v43  ;;  %v680_v10 = vld [vmem:[#allocation7 + $0x298] sm:$0xff]  ;;  %v677_v11 = vld [vmem:[#allocation7 + $0x280] sm:$0xff]  ;;  %v679_v12 = vld [vmem:[#allocation7 + $0x290] sm:$0xff] }
  0x9f   : > { %838 = vmatprep.subr.mxu0 %v620_v20  ;;  %787 = vmatprep.subr.mxu1 %v706_v45  ;;  %v674_v13 = vld [vmem:[#allocation7 + $0x268] sm:$0xff]  ;;  %v676_v14 = vld [vmem:[#allocation7 + $0x278] sm:$0xff]  ;;  %v673_v15 = vld [vmem:[#allocation7 + $0x260] sm:$0xff] }
  0xa0   : > { %839 = vmatpush1.msra.mxu0 %v619_v21  ;;  %788 = vmatpush2.msra.mxu1 %v705_v47  ;;  %v675_v16 = vld [vmem:[#allocation7 + $0x270] sm:$0xff]  ;;  %v670_v17 = vld [vmem:[#allocation7 + $0x248] sm:$0xff]  ;;  %v672_v18 = vld [vmem:[#allocation7 + $0x258] sm:$0xff] }
  0xa1   : > { %840 = vmatprep.subr.mxu0 %v616_v22  ;;  %789 = vmatprep.subr.mxu1 %v702_v49  ;;  %v669_v19 = vld [vmem:[#allocation7 + $0x240] sm:$0xff]  ;;  %v671_v20 = vld [vmem:[#allocation7 + $0x250] sm:$0xff]  ;;  %v666_v21 = vld [vmem:[#allocation7 + $0x228] sm:$0xff] }
  0xa2   : > { %841 = vmatpush1.msra.mxu0 %v615_v23  ;;  %790 = vmatpush2.msra.mxu1 %v701_v51  ;;  %v668_v22 = vld [vmem:[#allocation7 + $0x238] sm:$0xff]  ;;  %v665_v23 = vld [vmem:[#allocation7 + $0x220] sm:$0xff] }
  0xa3   : > { %842 = vmatprep.subr.mxu0 %v612_v24  ;;  %791 = vmatprep.subr.mxu1 %v698_v53  ;;  %v667_v24 = vld [vmem:[#allocation7 + $0x230] sm:$0xff] }
  0xa4   : > { %843 = vmatpush1.msra.mxu0 %v611_v25  ;;  %792 = vmatpush2.msra.mxu1 %v697_v55  ;;  %v662_v25 = vld [vmem:[#allocation7 + $0x208] sm:$0xff]  ;;  %v947_v53 = vld [vmem:[#allocation8 + $0xf0] sm:$0xff] }
  0xa5   : > { %844 = vmatprep.subr.mxu0 %v608_v26  ;;  %793 = vmatprep.subr.mxu1 %v694_v57  ;;  %v664_v26 = vld [vmem:[#allocation7 + $0x218] sm:$0xff]  ;;  %v1010_v57 = vld [vmem:[#allocation8 + $0x2e8] sm:$0xff] }
  0xa6   : > { %845 = vmatpush1.msra.mxu0 %v607_v27  ;;  %794 = vmatpush2.msra.mxu1 %v693_v59  ;;  %v661_v27 = vld [vmem:[#allocation7 + $0x200] sm:$0xff] }
  0xa7   : > { %846 = vmatprep.subr.mxu0 %v604_v28  ;;  %795 = vmatprep.subr.mxu1 %v690_v61  ;;  %v663_v28 = vld [vmem:[#allocation7 + $0x210] sm:$0xff]  ;;  %v1009_v59 = vld [vmem:[#allocation8 + $0x2e0] sm:$0xff]  ;;  %v1008_v61 = vld [vmem:[#allocation8 + $0x2d8] sm:$0xff] }
  0xa8   : > { %847 = vmatpush1.msra.mxu0 %v603_v29  ;;  %796 = vmatpush2.msra.mxu1 %v689_v63  ;;  %v948_v29 = vld [vmem:[#allocation8 + $0xf8] sm:$0xff]  ;;  %v1007_v63 = vld [vmem:[#allocation8 + $0x2d0] sm:$0xff] }
  0xa9   : > { %848 = vmatprep.subr.mxu0 %v600_v30  ;;  %797 = vmatprep.subr.mxu1 %v686_v1  ;;  %v1012_v30 = vld [vmem:[#allocation8 + $0x2f8] sm:$0xff]  ;;  %v1006_v1 = vld [vmem:[#allocation8 + $0x2c8] sm:$0xff] }
  0xaa   : > { %849 = vmatpush1.msra.mxu0 %v599_v31  ;;  %798 = vmatpush2.msra.mxu1 %v685_v3  ;;  %v491_v31 = vlaneseq  ;;  %v1005_v3 = vld [vmem:[#allocation8 + $0x2c0] sm:$0xff] }
  0xab   : > { %850 = vmatprep.subr.mxu0 %v724_v32  ;;  %799 = vmatprep.subr.mxu1 %v682_v5  ;;  %v1004_v5 = vld [vmem:[#allocation8 + $0x2b8] sm:$0xff] }
  0xac   : > { %851 = vmatpush2.msra.mxu0 %v723_v33  ;;  %800 = vmatpush2.msra.mxu1 %v681_v7  ;;  %v2028_v32 = vshrl.u32 %v491_v31, 7  ;;  %v1003_v7 = vld [vmem:[#allocation8 + $0x2b0] sm:$0xff] }
  0xad   : > { %852 = vmatprep.subr.mxu0 %v720_v34  ;;  %801 = vmatprep.subr.mxu1 %v678_v9  ;;  %v489_v34 = vld [vmem:[%s2079_s2] sm:$0x3]  ;;  %v1002_v9 = vld [vmem:[#allocation8 + $0x2a8] sm:$0xff]  ;;  %v991_v31 = vld [vmem:[#allocation8 + $0x250] sm:$0xff] }
  0xae   : > { %853 = vmatpush2.msra.mxu0 %v719_v36  ;;  %802 = vmatpush2.msra.mxu1 %v677_v11  ;;  %v2031_v33 = vsub.s32 0, %v2028_v32  ;;  %v2037_v35 = vsub.s32 1, %v2028_v32  ;;  %v1001_v11 = vld [vmem:[#allocation8 + $0x2a0] sm:$0xff] }
  0xaf   : > { %854 = vmatprep.subr.mxu0 %v716_v38  ;;  %803 = vmatprep.subr.mxu1 %v674_v13  ;;  %v1000_v13 = vld [vmem:[#allocation8 + $0x298] sm:$0xff] }
  0xb0   : > { %855 = vmatpush2.msra.mxu0 %v715_v40  ;;  %804 = vmatpush2.msra.mxu1 %v673_v15  ;;  %v494_v36 = vrot.slane %v489_v34, %v2031_v33  ;;  %v498_v37 = vrot.slane %v489_v34, %v2037_v35  ;;  %v999_v15 = vld [vmem:[#allocation8 + $0x290] sm:$0xff]  ;;  %v926_v34 = vld [vmem:[#allocation8 + $0x48] sm:$0xff] }
  0xb1   : > { %856 = vmatprep.subr.mxu0 %v712_v42  ;;  %805 = vmatprep.subr.mxu1 %v670_v17  ;;  %v998_v17 = vld [vmem:[#allocation8 + $0x288] sm:$0xff] }
  0xb2   : > { %857 = vmatpush2.msra.mxu0 %v711_v44  ;;  %806 = vmatpush2.msra.mxu1 %v669_v19  ;;  %v997_v19 = vld [vmem:[#allocation8 + $0x280] sm:$0xff] }
  0xb3   : > { %858 = vmatprep.subr.mxu0 %v708_v46  ;;  %807 = vmatprep.subr.mxu1 %v666_v21  ;;  %v996_v21 = vld [vmem:[#allocation8 + $0x278] sm:$0xff] }
  0xb4   : > { %859 = vmatpush2.msra.mxu0 %v707_v48  ;;  %808 = vmatpush2.msra.mxu1 %v665_v23  ;;  %v995_v23 = vld [vmem:[#allocation8 + $0x270] sm:$0xff] }
  0xb5   : > { %860 = vmatprep.subr.mxu0 %v704_v50  ;;  %809 = vmatprep.subr.mxu1 %v662_v25  ;;  %v994_v25 = vld [vmem:[#allocation8 + $0x268] sm:$0xff] }
  0xb6   : > { %861 = vmatpush2.msra.mxu0 %v703_v52  ;;  %810 = vmatpush2.msra.mxu1 %v661_v27  ;;  %v993_v27 = vld [vmem:[#allocation8 + $0x260] sm:$0xff] }
  0xb7   : > { %862 = vmatprep.subr.mxu0 %v700_v54  ;;  %1057 = vmatprep.subr.mxu1 %v948_v29  ;;  %v1011_v54 = vld [vmem:[#allocation8 + $0x2f0] sm:$0xff]  ;;  %v992_v29 = vld [vmem:[#allocation8 + $0x258] sm:$0xff] }
  0xb8   : > { %863 = vmatpush2.msra.mxu0 %v699_v56  ;;  %v946_v56 = vld [vmem:[#allocation8 + $0xe8] sm:$0xff] }
  0xb9   : > { %864 = vmatprep.subr.mxu0 %v696_v58  ;;  %v945_v58 = vld [vmem:[#allocation8 + $0xe0] sm:$0xff] }
  0xba   : > { %865 = vmatpush2.msra.mxu0 %v695_v60  ;;  %v944_v60 = vld [vmem:[#allocation8 + $0xd8] sm:$0xff] }
  0xbb   : > { %866 = vmatprep.subr.mxu0 %v692_v62  ;;  %v943_v62 = vld [vmem:[#allocation8 + $0xd0] sm:$0xff] }
  0xbc   : > { %867 = vmatpush2.msra.mxu0 %v691_v0  ;;  %v942_v0 = vld [vmem:[#allocation8 + $0xc8] sm:$0xff] }
  0xbd   : > { %868 = vmatprep.subr.mxu0 %v688_v2  ;;  %v941_v2 = vld [vmem:[#allocation8 + $0xc0] sm:$0xff] }
  0xbe   : > { %869 = vmatpush2.msra.mxu0 %v687_v4  ;;  %v940_v4 = vld [vmem:[#allocation8 + $0xb8] sm:$0xff] }
  0xbf   : > { %870 = vmatprep.subr.mxu0 %v684_v6  ;;  %v939_v6 = vld [vmem:[#allocation8 + $0xb0] sm:$0xff] }
  0xc0   : > { %871 = vmatpush2.msra.mxu0 %v683_v8  ;;  %v938_v8 = vld [vmem:[#allocation8 + $0xa8] sm:$0xff] }
  0xc1   : > { %872 = vmatprep.subr.mxu0 %v680_v10  ;;  %v937_v10 = vld [vmem:[#allocation8 + $0xa0] sm:$0xff] }
  0xc2   : > { %873 = vmatpush2.msra.mxu0 %v679_v12  ;;  %v936_v12 = vld [vmem:[#allocation8 + $0x98] sm:$0xff] }
  0xc3   : > { %874 = vmatprep.subr.mxu0 %v676_v14  ;;  %v935_v14 = vld [vmem:[#allocation8 + $0x90] sm:$0xff] }
  0xc4   : > { %875 = vmatpush2.msra.mxu0 %v675_v16  ;;  %v934_v16 = vld [vmem:[#allocation8 + $0x88] sm:$0xff] }
  0xc5   : > { %876 = vmatprep.subr.mxu0 %v672_v18  ;;  %v933_v18 = vld [vmem:[#allocation8 + $0x80] sm:$0xff] }
  0xc6   : > { %877 = vmatpush2.msra.mxu0 %v671_v20  ;;  %v932_v20 = vld [vmem:[#allocation8 + $0x78] sm:$0xff] }
  0xc7   : > { %878 = vmatprep.subr.mxu0 %v668_v22  ;;  %v931_v22 = vld [vmem:[#allocation8 + $0x70] sm:$0xff] }
  0xc8   : > { %879 = vmatpush2.msra.mxu0 %v667_v24  ;;  %v930_v24 = vld [vmem:[#allocation8 + $0x68] sm:$0xff] }
  0xc9   : > { %880 = vmatprep.subr.mxu0 %v664_v26  ;;  %v929_v26 = vld [vmem:[#allocation8 + $0x60] sm:$0xff] }
  0xca   : > { %881 = vmatpush2.msra.mxu0 %v663_v28  ;;  %v928_v28 = vld [vmem:[#allocation8 + $0x58] sm:$0xff] }
  0xcb   : > { %1128 = vmatprep.subr.mxu0 %v1012_v30  ;;  %v927_v30 = vld [vmem:[#allocation8 + $0x50] sm:$0xff] }
 0x14b   : > { %v578_v38 = vpop.f32.mrf.mxu0 }
 0x14c   : > { %v579_v39 = vadd.f32 %v578_v38, %v494_v36  ;;  %v990_v36 = vld [vmem:[#allocation8 + $0x248] sm:$0xff]  ;;  %v989_v38 = vld [vmem:[#allocation8 + $0x240] sm:$0xff] }
 0x14d   : > { %v580_v40 = vpop.f32.mrf.mxu0 }
 0x14e   : > { %v585_v41 = vmin.f32 %v579_v39, 0.0  ;;  %v581_v42 = vadd.f32 %v580_v40, %v498_v37  ;;  %vm583_vm3 = vcmp.gt.f32.partialorder %v579_v39, 0.0  ;;  %v925_v37 = vld [vmem:[#allocation8 + $0x40] sm:$0xff]  ;;  %v988_v40 = vld [vmem:[#allocation8 + $0x238] sm:$0xff] }
 0x150   : > { %v587_v43 = vmul.f32 1.442695, %v585_v41  ;;  %v586_v44 = vmin.f32 %v581_v42, 0.0  ;;  %vm584_vm2 = vcmp.gt.f32.partialorder %v581_v42, 0.0  ;;  %v923_v41 = vld [vmem:[#allocation8 + $0x30] sm:$0xff] }
 0x152   : > { %1607 = vpow2.f32 %v587_v43  ;;  %v589_v45 = vmul.f32 1.442695, %v586_v44  ;;  %v922_v43 = vld [vmem:[#allocation8 + $0x28] sm:$0xff] }
 0x153   : > { %v986_v44 = vld [vmem:[#allocation8 + $0x228] sm:$0xff] }
 0x154   : > { %1609 = vpow2.f32 %v589_v45  ;;  %v921_v45 = vld [vmem:[#allocation8 + $0x20] sm:$0xff] }
 0x15f   : > { %v1608_v46 = vpop.eup %1607 }
 0x160   : > { %v1471_v47 = vadd.f32 -1.0, %v1608_v46  ;;  %v985_v46 = vld [vmem:[#allocation8 + $0x220] sm:$0xff] }
 0x161   : > { %v1610_v48 = vpop.eup %1609 }
 0x162   : > { %v1472_v49 = vadd.f32 -1.0, %v1610_v48  ;;  %v593_v50 = vmul.f32 0.6, %v1471_v47  ;;  %v920_v47 = vld [vmem:[#allocation8 + $0x18] sm:$0xff] }
 0x163   : > { %v984_v48 = vld [vmem:[#allocation8 + $0x218] sm:$0xff] }
 0x164   : > { %v594_v51 = vmul.f32 0.6, %v1472_v49  ;;  %v595_v55 = vsel %vm583_vm3, %v579_v39, %v593_v50  ;;  %v924_v39 = vld [vmem:[#allocation8 + $0x38] sm:$0xff]  ;;  %v919_v49 = vld [vmem:[#allocation8 + $0x10] sm:$0xff] }
 0x165   : > { %v983_v50 = vld [vmem:[#allocation8 + $0x210] sm:$0xff] }
 0x166   : > { %v596_v52 = vsel %vm584_vm2, %v581_v42, %v594_v51  ;;  %v987_v42 = vld [vmem:[#allocation8 + $0x230] sm:$0xff]  ;;  %v918_v51 = vld [vmem:[#allocation8 + $0x8] sm:$0xff] }
 0x167   : > { %811 = vmatprep.mubr.f32.mxu1 %v596_v52  ;;  %882 = vmatprep.mubr.f32.mxu0 %v596_v52  ;;  %v982_v52 = vld [vmem:[#allocation8 + $0x208] sm:$0xff] }
 0x168   : > { %812 = vmatmul.mubr.f32.vlgmr.msra.gmra.mxu1 %v595_v55  ;;  %883 = vmatmul.mubr.f32.vlgmr.msra.gmra.mxu0 %v595_v55  ;;  %v980_v55 = vld [vmem:[#allocation8 + $0x1f8] sm:$0xff] }
 0x169   : > { %1058 = vmatpush1.msra.mxu1 %v947_v53  ;;  %1129 = vmatpush1.msra.mxu0 %v1011_v54  ;;  %v917_v53 = vld [vmem:[#allocation8] sm:$0xff] }
 0x16a   : > { %1059 = vmatprep.subr.mxu1 %v946_v56  ;;  %1130 = vmatprep.subr.mxu0 %v1010_v57  ;;  %v981_v54 = vld [vmem:[#allocation8 + $0x200] sm:$0xff]  ;;  %v1044_v56 = vld [vmem:[#allocation8 + $0x3f8] sm:$0xff]  ;;  %v979_v57 = vld [vmem:[#allocation8 + $0x1f0] sm:$0xff] }
 0x16b   : > { %1060 = vmatpush1.msra.mxu1 %v945_v58  ;;  %1131 = vmatpush1.msra.mxu0 %v1009_v59  ;;  %v1043_v58 = vld [vmem:[#allocation8 + $0x3f0] sm:$0xff]  ;;  %v978_v59 = vld [vmem:[#allocation8 + $0x1e8] sm:$0xff] }
 0x16c   : > { %1061 = vmatprep.subr.mxu1 %v944_v60  ;;  %1132 = vmatprep.subr.mxu0 %v1008_v61  ;;  %v1042_v60 = vld [vmem:[#allocation8 + $0x3e8] sm:$0xff]  ;;  %v977_v61 = vld [vmem:[#allocation8 + $0x1e0] sm:$0xff] }
 0x16d   : > { %1062 = vmatpush1.msra.mxu1 %v943_v62  ;;  %1133 = vmatpush1.msra.mxu0 %v1007_v63  ;;  %v1041_v62 = vld [vmem:[#allocation8 + $0x3e0] sm:$0xff]  ;;  %v976_v63 = vld [vmem:[#allocation8 + $0x1d8] sm:$0xff] }
 0x16e   : > { %1063 = vmatprep.subr.mxu1 %v942_v0  ;;  %1134 = vmatprep.subr.mxu0 %v1006_v1  ;;  %v1040_v0 = vld [vmem:[#allocation8 + $0x3d8] sm:$0xff]  ;;  %v975_v1 = vld [vmem:[#allocation8 + $0x1d0] sm:$0xff] }
 0x16f   : > { %1064 = vmatpush1.msra.mxu1 %v941_v2  ;;  %1135 = vmatpush1.msra.mxu0 %v1005_v3  ;;  %v1039_v2 = vld [vmem:[#allocation8 + $0x3d0] sm:$0xff]  ;;  %v974_v3 = vld [vmem:[#allocation8 + $0x1c8] sm:$0xff] }
 0x170   : > { %1065 = vmatprep.subr.mxu1 %v940_v4  ;;  %1136 = vmatprep.subr.mxu0 %v1004_v5  ;;  %v1038_v4 = vld [vmem:[#allocation8 + $0x3c8] sm:$0xff]  ;;  %v973_v5 = vld [vmem:[#allocation8 + $0x1c0] sm:$0xff] }
 0x171   : > { %1066 = vmatpush1.msra.mxu1 %v939_v6  ;;  %1137 = vmatpush1.msra.mxu0 %v1003_v7  ;;  %v1037_v6 = vld [vmem:[#allocation8 + $0x3c0] sm:$0xff]  ;;  %v972_v7 = vld [vmem:[#allocation8 + $0x1b8] sm:$0xff] }
 0x172   : > { %1067 = vmatprep.subr.mxu1 %v938_v8  ;;  %1138 = vmatprep.subr.mxu0 %v1002_v9  ;;  %v1036_v8 = vld [vmem:[#allocation8 + $0x3b8] sm:$0xff]  ;;  %v971_v9 = vld [vmem:[#allocation8 + $0x1b0] sm:$0xff] }
 0x173   : > { %1068 = vmatpush1.msra.mxu1 %v937_v10  ;;  %1139 = vmatpush1.msra.mxu0 %v1001_v11  ;;  %v1035_v10 = vld [vmem:[#allocation8 + $0x3b0] sm:$0xff]  ;;  %v970_v11 = vld [vmem:[#allocation8 + $0x1a8] sm:$0xff] }
 0x174   : > { %1069 = vmatprep.subr.mxu1 %v936_v12  ;;  %1140 = vmatprep.subr.mxu0 %v1000_v13  ;;  %v1034_v12 = vld [vmem:[#allocation8 + $0x3a8] sm:$0xff]  ;;  %v969_v13 = vld [vmem:[#allocation8 + $0x1a0] sm:$0xff] }
 0x175   : > { %1070 = vmatpush1.msra.mxu1 %v935_v14  ;;  %1141 = vmatpush1.msra.mxu0 %v999_v15  ;;  %v1033_v14 = vld [vmem:[#allocation8 + $0x3a0] sm:$0xff]  ;;  %v968_v15 = vld [vmem:[#allocation8 + $0x198] sm:$0xff] }
 0x176   : > { %1071 = vmatprep.subr.mxu1 %v934_v16  ;;  %1142 = vmatprep.subr.mxu0 %v998_v17  ;;  %v1032_v16 = vld [vmem:[#allocation8 + $0x398] sm:$0xff]  ;;  %v967_v17 = vld [vmem:[#allocation8 + $0x190] sm:$0xff] }
 0x177   : > { %1072 = vmatpush1.msra.mxu1 %v933_v18  ;;  %1143 = vmatpush1.msra.mxu0 %v997_v19  ;;  %v1031_v18 = vld [vmem:[#allocation8 + $0x390] sm:$0xff]  ;;  %v966_v19 = vld [vmem:[#allocation8 + $0x188] sm:$0xff] }
 0x178   : > { %1073 = vmatprep.subr.mxu1 %v932_v20  ;;  %1144 = vmatprep.subr.mxu0 %v996_v21  ;;  %v1030_v20 = vld [vmem:[#allocation8 + $0x388] sm:$0xff]  ;;  %v965_v21 = vld [vmem:[#allocation8 + $0x180] sm:$0xff] }
 0x179   : > { %1074 = vmatpush1.msra.mxu1 %v931_v22  ;;  %1145 = vmatpush1.msra.mxu0 %v995_v23  ;;  %v1029_v22 = vld [vmem:[#allocation8 + $0x380] sm:$0xff]  ;;  %v964_v23 = vld [vmem:[#allocation8 + $0x178] sm:$0xff] }
 0x17a   : > { %1075 = vmatprep.subr.mxu1 %v930_v24  ;;  %1146 = vmatprep.subr.mxu0 %v994_v25  ;;  %v1028_v24 = vld [vmem:[#allocation8 + $0x378] sm:$0xff]  ;;  %v963_v25 = vld [vmem:[#allocation8 + $0x170] sm:$0xff] }
 0x17b   : > { %1076 = vmatpush1.msra.mxu1 %v929_v26  ;;  %1147 = vmatpush1.msra.mxu0 %v993_v27  ;;  %v1027_v26 = vld [vmem:[#allocation8 + $0x370] sm:$0xff]  ;;  %v962_v27 = vld [vmem:[#allocation8 + $0x168] sm:$0xff] }
 0x17c   : > { %1077 = vmatprep.subr.mxu1 %v928_v28  ;;  %1148 = vmatprep.subr.mxu0 %v992_v29  ;;  %v1026_v28 = vld [vmem:[#allocation8 + $0x368] sm:$0xff]  ;;  %v961_v29 = vld [vmem:[#allocation8 + $0x160] sm:$0xff] }
 0x17d   : > { %1078 = vmatpush1.msra.mxu1 %v927_v30  ;;  %1149 = vmatpush1.msra.mxu0 %v991_v31  ;;  %v1025_v30 = vld [vmem:[#allocation8 + $0x360] sm:$0xff]  ;;  %v960_v31 = vld [vmem:[#allocation8 + $0x158] sm:$0xff] }
 0x17e   : > { %1079 = vmatprep.subr.mxu1 %v926_v34  ;;  %1150 = vmatprep.subr.mxu0 %v990_v36  ;;  %v1024_v34 = vld [vmem:[#allocation8 + $0x358] sm:$0xff]  ;;  %v959_v36 = vld [vmem:[#allocation8 + $0x150] sm:$0xff] }
 0x17f   : > { %1080 = vmatpush1.msra.mxu1 %v925_v37  ;;  %1151 = vmatpush1.msra.mxu0 %v989_v38  ;;  %v1023_v37 = vld [vmem:[#allocation8 + $0x350] sm:$0xff]  ;;  %v958_v38 = vld [vmem:[#allocation8 + $0x148] sm:$0xff] }
 0x180   : > { %1081 = vmatprep.subr.mxu1 %v924_v39  ;;  %1152 = vmatprep.subr.mxu0 %v988_v40  ;;  %v1022_v39 = vld [vmem:[#allocation8 + $0x348] sm:$0xff]  ;;  %v957_v40 = vld [vmem:[#allocation8 + $0x140] sm:$0xff] }
 0x181   : > { %1082 = vmatpush1.msra.mxu1 %v923_v41  ;;  %1153 = vmatpush1.msra.mxu0 %v987_v42  ;;  %v1021_v41 = vld [vmem:[#allocation8 + $0x340] sm:$0xff]  ;;  %v956_v42 = vld [vmem:[#allocation8 + $0x138] sm:$0xff] }
 0x182   : > { %1083 = vmatprep.subr.mxu1 %v922_v43  ;;  %1154 = vmatprep.subr.mxu0 %v986_v44  ;;  %v1020_v43 = vld [vmem:[#allocation8 + $0x338] sm:$0xff]  ;;  %v955_v44 = vld [vmem:[#allocation8 + $0x130] sm:$0xff] }
 0x183   : > { %1084 = vmatpush1.msra.mxu1 %v921_v45  ;;  %1155 = vmatpush1.msra.mxu0 %v985_v46  ;;  %v1019_v45 = vld [vmem:[#allocation8 + $0x330] sm:$0xff]  ;;  %v954_v46 = vld [vmem:[#allocation8 + $0x128] sm:$0xff] }
 0x184   : > { %1085 = vmatprep.subr.mxu1 %v920_v47  ;;  %1156 = vmatprep.subr.mxu0 %v984_v48  ;;  %v1018_v47 = vld [vmem:[#allocation8 + $0x328] sm:$0xff]  ;;  %v953_v48 = vld [vmem:[#allocation8 + $0x120] sm:$0xff] }
 0x185   : > { %1086 = vmatpush1.msra.mxu1 %v919_v49  ;;  %1157 = vmatpush1.msra.mxu0 %v983_v50  ;;  %v1017_v49 = vld [vmem:[#allocation8 + $0x320] sm:$0xff]  ;;  %v952_v50 = vld [vmem:[#allocation8 + $0x118] sm:$0xff] }
 0x186   : > { %1087 = vmatprep.subr.mxu1 %v918_v51  ;;  %1158 = vmatprep.subr.mxu0 %v982_v52  ;;  %v1016_v51 = vld [vmem:[#allocation8 + $0x318] sm:$0xff]  ;;  %v951_v52 = vld [vmem:[#allocation8 + $0x110] sm:$0xff] }
 0x187   : > { %1088 = vmatpush1.msra.mxu1 %v917_v53  ;;  %1159 = vmatpush1.msra.mxu0 %v981_v54  ;;  %v1015_v53 = vld [vmem:[#allocation8 + $0x310] sm:$0xff]  ;;  %v950_v54 = vld [vmem:[#allocation8 + $0x108] sm:$0xff] }
 0x188   : > { %1089 = vmatprep.subr.mxu1 %v980_v55  ;;  %1160 = vmatprep.subr.mxu0 %v1044_v56  ;;  %v1014_v55 = vld [vmem:[#allocation8 + $0x308] sm:$0xff]  ;;  %v949_v56 = vld [vmem:[#allocation8 + $0x100] sm:$0xff] }
 0x189   : > { %1090 = vmatpush2.msra.mxu1 %v979_v57  ;;  %1161 = vmatpush2.msra.mxu0 %v1043_v58  ;;  %v1013_v57 = vld [vmem:[#allocation8 + $0x300] sm:$0xff]  ;;  %v1244_v58 = vld [vmem:[#allocation10 + $0xf8] sm:$0xff] }
 0x18a   : > { %1091 = vmatprep.subr.mxu1 %v978_v59  ;;  %1162 = vmatprep.subr.mxu0 %v1042_v60  ;;  %v737_v59 = vsub.s32 2, %v2028_v32  ;;  %v725_v60 = vld [vmem:[%s2081_s4] sm:$0xf] }
 0x18b   : > { %1092 = vmatpush2.msra.mxu1 %v977_v61  ;;  %1163 = vmatpush2.msra.mxu0 %v1041_v62  ;;  %v741_v61 = vsub.s32 3, %v2028_v32  ;;  %v730_v62 = vrot.slane %v725_v60, %v2031_v33 }
 0x18c   : > { %1093 = vmatprep.subr.mxu1 %v976_v63  ;;  %1164 = vmatprep.subr.mxu0 %v1040_v0  ;;  %v738_v63 = vrot.slane %v725_v60, %v737_v59  ;;  %v1232_v59 = vld [vmem:[#allocation10 + $0x98] sm:$0xff] }
 0x18d   : > { %1094 = vmatpush2.msra.mxu1 %v975_v1  ;;  %1165 = vmatpush2.msra.mxu0 %v1039_v2  ;;  %v734_v2 = vrot.slane %v725_v60, %v2037_v35 }
 0x18e   : > { %1095 = vmatprep.subr.mxu1 %v974_v3  ;;  %1166 = vmatprep.subr.mxu0 %v1038_v4  ;;  %v742_v3 = vrot.slane %v725_v60, %v741_v61  ;;  %v1216_v60 = vld [vmem:[#allocation10 + $0x18] sm:$0xff]  ;;  %v1231_v61 = vld [vmem:[#allocation10 + $0x90] sm:$0xff] }
 0x18f   : > { %1096 = vmatpush2.msra.mxu1 %v973_v5  ;;  %1167 = vmatpush2.msra.mxu0 %v1037_v6 }
 0x190   : > { %1097 = vmatprep.subr.mxu1 %v972_v7  ;;  %1168 = vmatprep.subr.mxu0 %v1036_v8 }
 0x191   : > { %1098 = vmatpush2.msra.mxu1 %v971_v9  ;;  %1169 = vmatpush2.msra.mxu0 %v1035_v10 }
 0x192   : > { %1099 = vmatprep.subr.mxu1 %v970_v11  ;;  %1170 = vmatprep.subr.mxu0 %v1034_v12 }
 0x193   : > { %1100 = vmatpush2.msra.mxu1 %v969_v13  ;;  %1171 = vmatpush2.msra.mxu0 %v1033_v14 }
 0x194   : > { %1101 = vmatprep.subr.mxu1 %v968_v15  ;;  %1172 = vmatprep.subr.mxu0 %v1032_v16 }
 0x195   : > { %1102 = vmatpush2.msra.mxu1 %v967_v17  ;;  %1173 = vmatpush2.msra.mxu0 %v1031_v18 }
 0x196   : > { %1103 = vmatprep.subr.mxu1 %v966_v19  ;;  %1174 = vmatprep.subr.mxu0 %v1030_v20 }
 0x197   : > { %1104 = vmatpush2.msra.mxu1 %v965_v21  ;;  %1175 = vmatpush2.msra.mxu0 %v1029_v22 }
 0x198   : > { %1105 = vmatprep.subr.mxu1 %v964_v23  ;;  %1176 = vmatprep.subr.mxu0 %v1028_v24 }
 0x199   : > { %1106 = vmatpush2.msra.mxu1 %v963_v25  ;;  %1177 = vmatpush2.msra.mxu0 %v1027_v26 }
 0x19a   : > { %1107 = vmatprep.subr.mxu1 %v962_v27  ;;  %1178 = vmatprep.subr.mxu0 %v1026_v28 }
 0x19b   : > { %1108 = vmatpush2.msra.mxu1 %v961_v29  ;;  %1179 = vmatpush2.msra.mxu0 %v1025_v30 }
 0x19c   : > { %1109 = vmatprep.subr.mxu1 %v960_v31  ;;  %1180 = vmatprep.subr.mxu0 %v1024_v34 }
 0x19d   : > { %1110 = vmatpush2.msra.mxu1 %v959_v36  ;;  %1181 = vmatpush2.msra.mxu0 %v1023_v37  ;;  %v1228_v36 = vld [vmem:[#allocation10 + $0x78] sm:$0xff]  ;;  %v1243_v37 = vld [vmem:[#allocation10 + $0xf0] sm:$0xff] }
 0x19e   : > { %1111 = vmatprep.subr.mxu1 %v958_v38  ;;  %1182 = vmatprep.subr.mxu0 %v1022_v39  ;;  %v1227_v38 = vld [vmem:[#allocation10 + $0x70] sm:$0xff]  ;;  %v1242_v39 = vld [vmem:[#allocation10 + $0xe8] sm:$0xff] }
 0x19f   : > { %1112 = vmatpush2.msra.mxu1 %v957_v40  ;;  %1183 = vmatpush2.msra.mxu0 %v1021_v41  ;;  %v1226_v40 = vld [vmem:[#allocation10 + $0x68] sm:$0xff]  ;;  %v1241_v41 = vld [vmem:[#allocation10 + $0xe0] sm:$0xff] }
 0x1a0   : > { %1113 = vmatprep.subr.mxu1 %v956_v42  ;;  %1184 = vmatprep.subr.mxu0 %v1020_v43  ;;  %v1225_v42 = vld [vmem:[#allocation10 + $0x60] sm:$0xff]  ;;  %v1240_v43 = vld [vmem:[#allocation10 + $0xd8] sm:$0xff] }
 0x1a1   : > { %1114 = vmatpush2.msra.mxu1 %v955_v44  ;;  %1185 = vmatpush2.msra.mxu0 %v1019_v45  ;;  %v1224_v44 = vld [vmem:[#allocation10 + $0x58] sm:$0xff]  ;;  %v1239_v45 = vld [vmem:[#allocation10 + $0xd0] sm:$0xff] }
 0x1a2   : > { %1115 = vmatprep.subr.mxu1 %v954_v46  ;;  %1186 = vmatprep.subr.mxu0 %v1018_v47  ;;  %v1223_v46 = vld [vmem:[#allocation10 + $0x50] sm:$0xff]  ;;  %v1238_v47 = vld [vmem:[#allocation10 + $0xc8] sm:$0xff] }
 0x1a3   : > { %1116 = vmatpush2.msra.mxu1 %v953_v48  ;;  %1187 = vmatpush2.msra.mxu0 %v1017_v49  ;;  %v1222_v48 = vld [vmem:[#allocation10 + $0x48] sm:$0xff]  ;;  %v1237_v49 = vld [vmem:[#allocation10 + $0xc0] sm:$0xff] }
 0x1a4   : > { %1117 = vmatprep.subr.mxu1 %v952_v50  ;;  %1188 = vmatprep.subr.mxu0 %v1016_v51  ;;  %v1221_v50 = vld [vmem:[#allocation10 + $0x40] sm:$0xff]  ;;  %v1236_v51 = vld [vmem:[#allocation10 + $0xb8] sm:$0xff] }
 0x1a5   : > { %1118 = vmatpush2.msra.mxu1 %v951_v52  ;;  %1189 = vmatpush2.msra.mxu0 %v1015_v53  ;;  %v1220_v52 = vld [vmem:[#allocation10 + $0x38] sm:$0xff]  ;;  %v1235_v53 = vld [vmem:[#allocation10 + $0xb0] sm:$0xff] }
 0x1a6   : > { %1119 = vmatprep.subr.mxu1 %v950_v54  ;;  %1190 = vmatprep.subr.mxu0 %v1014_v55  ;;  %v1219_v54 = vld [vmem:[#allocation10 + $0x30] sm:$0xff]  ;;  %v1234_v55 = vld [vmem:[#allocation10 + $0xa8] sm:$0xff] }
 0x1a7   : > { %1120 = vmatpush2.msra.mxu1 %v949_v56  ;;  %1191 = vmatpush2.msra.mxu0 %v1013_v57  ;;  %v1218_v56 = vld [vmem:[#allocation10 + $0x28] sm:$0xff]  ;;  %v1233_v57 = vld [vmem:[#allocation10 + $0xa0] sm:$0xff] }
 0x1a8   : > { %1485 = vmatprep.subr.mxu1 %v1244_v58  ;;  %v1217_v58 = vld [vmem:[#allocation10 + $0x20] sm:$0xff] }
 0x228   : > { %v813_v0 = vpop.f32.mrf.mxu1  ;;  %v884_v1 = vpop.f32.mrf.mxu0 }
 0x229   : > { %v814_v4 = vadd.f32 %v813_v0, %v730_v62  ;;  %v885_v5 = vadd.f32 %v884_v1, %v738_v63  ;;  %v1215_v62 = vld [vmem:[#allocation10 + $0x10] sm:$0xff]  ;;  %v1230_v63 = vld [vmem:[#allocation10 + $0x88] sm:$0xff]  ;;  %v1229_v1 = vld [vmem:[#allocation10 + $0x80] sm:$0xff] }
 0x22a   : > { %v815_v6 = vpop.f32.mrf.mxu1  ;;  %v886_v7 = vpop.f32.mrf.mxu0  ;;  %v1214_v0 = vld [vmem:[#allocation10 + $0x8] sm:$0xff] }
 0x22b   : > { %v893_v8 = vmin.f32 %v814_v4, 0.0  ;;  %v895_v9 = vmin.f32 %v885_v5, 0.0  ;;  %v816_v10 = vadd.f32 %v815_v6, %v734_v2  ;;  %v887_v11 = vadd.f32 %v886_v7, %v742_v3  ;;  %v1213_v2 = vld [vmem:[#allocation10] sm:$0xff] }
 0x22c   : > { %vm889_vm5 = vcmp.gt.f32.partialorder %v814_v4, 0.0  ;;  %vm891_vm7 = vcmp.gt.f32.partialorder %v885_v5, 0.0  ;;  %v1045_v3 = vld [vmem:[%s2083_s6] sm:$0x3] }
 0x22d   : > { %v897_v12 = vmul.f32 1.442695, %v893_v8  ;;  %v901_v13 = vmul.f32 1.442695, %v895_v9  ;;  %v894_v14 = vmin.f32 %v816_v10, 0.0  ;;  %v896_v32 = vmin.f32 %v887_v11, 0.0 }
 0x22e   : > { %vm890_vm4 = vcmp.gt.f32.partialorder %v816_v10, 0.0  ;;  %vm892_vm6 = vcmp.gt.f32.partialorder %v887_v11, 0.0 }
 0x22f   : > { %1611 = vpow2.f32 %v897_v12  ;;  %v899_v15 = vmul.f32 1.442695, %v894_v14  ;;  %v903_v16 = vmul.f32 1.442695, %v896_v32 }
 0x230   : > { %1613 = vpow2.f32 %v901_v13 }
 0x231   : > { %1615 = vpow2.f32 %v899_v15 }
 0x232   : > { %1617 = vpow2.f32 %v903_v16 }
 0x23c   : > { %v1612_v17 = vpop.eup %1611 }
 0x23d   : > { %v1614_v18 = vpop.eup %1613  ;;  %v1473_v19 = vadd.f32 -1.0, %v1612_v17 }
 0x23e   : > { %v1475_v20 = vadd.f32 -1.0, %v1614_v18  ;;  %v1616_v21 = vpop.eup %1615 }
 0x23f   : > { %v1618_v22 = vpop.eup %1617  ;;  %v1474_v23 = vadd.f32 -1.0, %v1616_v21  ;;  %v909_v25 = vmul.f32 0.6, %v1473_v19 }
 0x240   : > { %v1476_v24 = vadd.f32 -1.0, %v1618_v22  ;;  %v911_v27 = vmul.f32 0.6, %v1475_v20 }
 0x241   : > { %v910_v26 = vmul.f32 0.6, %v1474_v23  ;;  %v913_v31 = vsel %vm889_vm5, %v814_v4, %v909_v25  ;;  %v1050_v4 = vrot.slane %v1045_v3, %v2031_v33 }
 0x242   : > { %v912_v28 = vmul.f32 0.6, %v1476_v24  ;;  %v915_v34 = vsel %vm891_vm7, %v885_v5, %v911_v27  ;;  %v1054_v5 = vrot.slane %v1045_v3, %v2037_v35  ;;  %v1479_v24 = vld [vmem:[%s2085_s8] ss:$0 sm:$0xff] }
 0x243   : > { %v914_v29 = vsel %vm890_vm4, %v816_v10, %v910_v26 }
 0x244   : > { %1121 = vmatprep.mubr.f32.mxu1 %v914_v29  ;;  %v916_v30 = vsel %vm892_vm6, %v887_v11, %v912_v28 }
 0x245   : > { %1192 = vmatprep.mubr.f32.mxu0 %v916_v30  ;;  %1122 = vmatmul.mubr.f32.vlgmr.msra.gmra.mxu1 %v913_v31 }
 0x246   : > { %1193 = vmatmul.mubr.f32.vlgmr.msra.gmra.mxu0 %v915_v34  ;;  %1486 = vmatpush3.msra.mxu1 %v1228_v36  ;;  %v1481_v36 = vld [vmem:[%s2086_s9] ss:$0 sm:$0xff] }
 0x247   : > { %1487 = vmatprep.subr.mxu1 %v1243_v37 }
 0x248   : > { %1488 = vmatpush3.msra.mxu1 %v1227_v38 }
 0x249   : > { %1489 = vmatprep.subr.mxu1 %v1242_v39  ;;  %v1482_v39 = vld [vmem:[#allocation2] ss:$0 sm:$0xff] }
 0x24a   : > { %1490 = vmatpush3.msra.mxu1 %v1226_v40 }
 0x24b   : > { %1491 = vmatprep.subr.mxu1 %v1241_v41 }
 0x24c   : > { %1492 = vmatpush3.msra.mxu1 %v1225_v42 }
 0x24d   : > { %1493 = vmatprep.subr.mxu1 %v1240_v43 }
 0x24e   : > { %1494 = vmatpush3.msra.mxu1 %v1224_v44 }
 0x24f   : > { %1495 = vmatprep.subr.mxu1 %v1239_v45 }
 0x250   : > { %1496 = vmatpush3.msra.mxu1 %v1223_v46 }
 0x251   : > { %1497 = vmatprep.subr.mxu1 %v1238_v47 }
 0x252   : > { %1498 = vmatpush3.msra.mxu1 %v1222_v48 }
 0x253   : > { %1499 = vmatprep.subr.mxu1 %v1237_v49 }
 0x254   : > { %1500 = vmatpush3.msra.mxu1 %v1221_v50 }
 0x255   : > { %1501 = vmatprep.subr.mxu1 %v1236_v51 }
 0x256   : > { %1502 = vmatpush3.msra.mxu1 %v1220_v52 }
 0x257   : > { %1503 = vmatprep.subr.mxu1 %v1235_v53 }
 0x258   : > { %1504 = vmatpush3.msra.mxu1 %v1219_v54 }
 0x259   : > { %1505 = vmatprep.subr.mxu1 %v1234_v55 }
 0x25a   : > { %1506 = vmatpush3.msra.mxu1 %v1218_v56 }
 0x25b   : > { %1507 = vmatprep.subr.mxu1 %v1233_v57 }
 0x25c   : > { %1508 = vmatpush3.msra.mxu1 %v1217_v58 }
 0x25d   : > { %1509 = vmatprep.subr.mxu1 %v1232_v59 }
 0x25e   : > { %1510 = vmatpush3.msra.mxu1 %v1216_v60 }
 0x25f   : > { %1511 = vmatprep.subr.mxu1 %v1231_v61 }
 0x260   : > { %1512 = vmatpush3.msra.mxu1 %v1215_v62 }
 0x261   : > { %1513 = vmatprep.subr.mxu1 %v1230_v63 }
 0x262   : > { %1514 = vmatpush3.msra.mxu1 %v1214_v0 }
 0x263   : > { %1515 = vmatprep.subr.mxu1 %v1229_v1 }
 0x264   : > { %1516 = vmatpush3.msra.mxu1 %v1213_v2 }
 0x305   : > { %v1123_v6 = vpop.f32.mrf.mxu1 }
 0x306   : > { %v1124_v7 = vadd.f32 %v1123_v6, %v1050_v4  ;;  %v1194_v8 = vpop.f32.mrf.mxu0 }
 0x307   : > { %v1125_v9 = vpop.f32.mrf.mxu1 }
 0x308   : > { %v1195_v10 = vadd.f32 %v1194_v8, %v1124_v7  ;;  %v1126_v11 = vadd.f32 %v1125_v9, %v1054_v5  ;;  %v1196_v12 = vpop.f32.mrf.mxu0 }
 0x30a   : > { %v1201_v13 = vmin.f32 %v1195_v10, 0.0  ;;  %v1197_v14 = vadd.f32 %v1196_v12, %v1126_v11  ;;  %vm1199_vm9 = vcmp.gt.f32.partialorder %v1195_v10, 0.0 }
 0x30c   : > { %v1203_v32 = vmul.f32 1.442695, %v1201_v13  ;;  %v1202_v15 = vmin.f32 %v1197_v14, 0.0  ;;  %vm1200_vm8 = vcmp.gt.f32.partialorder %v1197_v14, 0.0 }
 0x30e   : > { %1619 = vpow2.f32 %v1203_v32  ;;  %v1205_v16 = vmul.f32 1.442695, %v1202_v15 }
 0x310   : > { %1621 = vpow2.f32 %v1205_v16 }
 0x31b   : > { %v1620_v17 = vpop.eup %1619 }
 0x31c   : > { %v1477_v18 = vadd.f32 -1.0, %v1620_v17 }
 0x31d   : > { %v1622_v19 = vpop.eup %1621 }
 0x31e   : > { %v1478_v33 = vadd.f32 -1.0, %v1622_v19  ;;  %v1209_v20 = vmul.f32 0.6, %v1477_v18 }
 0x320   : > { %v1210_v35 = vmul.f32 0.6, %v1478_v33  ;;  %v1211_v22 = vsel %vm1199_vm9, %v1195_v10, %v1209_v20 }
 0x322   : > { %v1212_v21 = vsel %vm1200_vm8, %v1197_v14, %v1210_v35 }
 0x323   : > { %1316 = vmatprep.mubr.f32.mxu1 %v1212_v21 }
 0x324   : > { %1317 = vmatmul.mubr.f32.vlgmr.msra.gmra.mxu1 %v1211_v22 }
 0x3e4   : > { %v1517_v23 = vpop.f32.mrf.mxu1 }
 0x3e6   : > { %v1518_v25 = vpop.f32.mrf.mxu1 }
 0x3e7   : > { %v1519_v26 = vadd.f32 %v1518_v25, %v1517_v23 }
 0x3e9   : > { %v1319_v27 = vadd.f32 %v1519_v26, %v1479_v24 }
 0x3eb   : > { %v1323_v28 = vmin.f32 %v1319_v27, 0.0  ;;  %vm1322_vm10 = vcmp.gt.f32.partialorder %v1319_v27, 0.0 }
 0x3ed   : > { %v1324_v29 = vmul.f32 1.442695, %v1323_v28 }
 0x3ef   : > { %1623 = vpow2.f32 %v1324_v29 }
 0x3fc   : > { %v1624_v30 = vpop.eup %1623 }
 0x3fd   : > { %v1480_v31 = vadd.f32 -1.0, %v1624_v30 }
 0x3ff   : > { %v1327_v34 = vmul.f32 0.6, %v1480_v31 }
 0x401   : > { %v1328_v37 = vsel %vm1322_vm10, %v1319_v27, %v1327_v34 }
 0x402   : > { %v1336_v38 = vmul.f32 %v1481_v36, %v1328_v37 }
 0x404   : > { %1337 = vadd.xlane.f32.xlu0 %v1336_v38 }
 0x48d   : > { %v1338_v40 = vpop.xlane.xlu0 %1337 }
 0x48e   : > { %v1346_v41 = vadd.f32 %v1482_v39, %v1338_v40 }
 0x490   : > { %1348 = vst.msk [vmem:[%s461_s22] sm:$0xff] %vm1347_vm11, %v1346_v41 }
 0x491 PF: > { %p25_p2 = scmp.ge.s32.totalorder %s1963_s10, 4   ;;  %s2104_s19 = smov %s1791_s20 }
 0x492   : > { %s2105_s20 = smov %s1795_s21  ;;  %s2106_s21 = smov %s1975_s29 }
 0x493   : > { %s2107_s22 = smov %s1963_s10  ;;  %27 = sbr.rel (!%p25_p2) target bundleno = 8 (0x8), region = 120 }
 0x498   :  { %1368 = vsyncpa [#allocation4], 1 }
 0x499   :  { %1370 = vsyncpa [#allocation4 + $0x1], 1 }
 0x49a   :  { %1371 = vsyncpa [#allocation6], 1 }
 0x49b   :  { %1372 = vsyncpa [#allocation9], 1 }

</bundles_post_ra>
